<compile_context>
chip_gen: v7x
topology: tpu7x:2x2x1
jax: 0.10.0
libtpu: 0.0.40
codegen_flags: <defaults>
</compile_context>

<pallas_src>
import jax
import jax.numpy as jnp
import numpy as np
from jax.experimental import pallas as pl
from jax.experimental.pallas import tpu as pltpu


def make_cross_attention_kernel(dim, num_heads, n_t):
    head_dim = dim // num_heads
    scale = head_dim ** (-0.5)
    bf16 = jnp.bfloat16
    f32 = jnp.float32

    def kernel(x_ref, t_ref, wq_ref, wk_ref, wv_ref, wp_ref, bp_ref, o_ref):
        # x_ref: (1, block_q, C)   t_ref: (1, N_t, C)
        block_q = x_ref.shape[1]

        # ---- Projections: bf16 MXU inputs, f32 accumulation ----
        xb = x_ref[0].astype(bf16)                       # (tq, C)
        tb = t_ref[0].astype(bf16)                       # (N_t, C)
        q = jnp.dot(xb, wq_ref[...].astype(bf16), preferred_element_type=f32)  # (tq, C)
        k = jnp.dot(tb, wk_ref[...].astype(bf16), preferred_element_type=f32)  # (N_t, C)
        v = jnp.dot(tb, wv_ref[...].astype(bf16), preferred_element_type=f32)  # (N_t, C)
        q = q * scale  # fold scale into q once (cheaper than scaling the score tensor)

        # ---- Head-batched attention: reshape once to (H, N, hd) ----
        qh = jnp.transpose(q.reshape(block_q, num_heads, head_dim), (1, 0, 2)).astype(bf16)
        kh = jnp.transpose(k.reshape(n_t, num_heads, head_dim), (1, 0, 2)).astype(bf16)
        vh = jnp.transpose(v.reshape(n_t, num_heads, head_dim), (1, 0, 2)).astype(bf16)

        s = jnp.einsum("hqd,hkd->hqk", qh, kh, preferred_element_type=f32)  # (H, tq, N_t)

        # Softmax in f32 (matches torch .float().softmax(-1))
        m = jnp.max(s, axis=-1, keepdims=True)
        e = jnp.exp(s - m)
        den = jnp.sum(e, axis=-1, keepdims=True)
        p = e * pl.reciprocal(den, approx=True)          # EUP reciprocal + VPU multiply
        # torch parity: attn.masked_fill(isnan(attn), 0)
        p = jnp.where(jnp.isnan(p), 0.0, p)
        # attn_drop is identity (p=0.0 / eval mode)

        ctx = jnp.einsum("hqk,hkd->hqd", p.astype(bf16), vh,
                         preferred_element_type=f32)     # (H, tq, hd)
        # == (attn @ v).transpose(1, 2).reshape(B, N_x, C)
        oc = jnp.transpose(ctx, (1, 0, 2)).reshape(block_q, dim)

        out = jnp.dot(oc.astype(bf16), wp_ref[...].astype(bf16),
                      preferred_element_type=f32) + bp_ref[...]
        # proj_drop is identity (p=0.0 / eval mode)
        o_ref[0] = out.astype(o_ref.dtype)

    return kernel


def cross_attention(x, t, w_q, w_kv, w_proj, b_proj, *, num_heads, block_q=None):
    B, N_x, C = x.shape
    _, N_t, _ = t.shape
    assert C % num_heads == 0
    hd = C // num_heads

    # Split kv weight so k / v are whole, lane-aligned matmul outputs.
    w_k = w_kv[:, :C]
    w_v = w_kv[:, C:]
    b_proj2d = b_proj.reshape(1, C)

    # Query-dimension tiling: more grid steps -> DMA/compute overlap + bounded VMEM.
    if block_q is None:
        block_q = N_x
        for cand in (512, 256, 128, 64, 32, 16, 8):
            if N_x % cand == 0:
                block_q = cand
                break
    assert N_x % block_q == 0
    n_q_blocks = N_x // block_q

    kernel = make_cross_attention_kernel(C, num_heads, N_t)

    # Advisory cost estimate for the XLA scheduler.
    flops = 2 * B * (N_x * C * C + 2 * N_t * C * C + 2 * N_x * N_t * C + N_x * C * C)
    transcendentals = B * num_heads * N_x * (N_t + 1)
    bytes_accessed = 4 * (2 * B * N_x * C + B * N_t * C + 4 * C * C + C)

    # Explicit VMEM budget (v7x only has 64 MiB physical VMEM).
    f32b = 4
    est = (2 * 2 * block_q * C + 2 * N_t * C + 2 * (4 * C * C + C)) * f32b
    est += (3 * block_q * C + 2 * N_t * C + 3 * num_heads * block_q * N_t
            + 2 * num_heads * block_q * hd) * f32b
    vmem_limit = int(min(max(2 * est, 32 << 20), 64 << 20))

    return pl.pallas_call(
        kernel,
        out_shape=jax.ShapeDtypeStruct((B, N_x, C), x.dtype),
        grid_spec=pltpu.PrefetchScalarGridSpec(
            num_scalar_prefetch=0,
            grid=(B, n_q_blocks),
            in_specs=[
                pl.BlockSpec((1, block_q, C), lambda b, i: (b, i, 0)),   # x tile
                pl.BlockSpec((1, N_t, C), lambda b, i: (b, 0, 0)),       # t (full seq)
                pl.BlockSpec((C, C), lambda b, i: (0, 0)),               # W_q
                pl.BlockSpec((C, C), lambda b, i: (0, 0)),               # W_k
                pl.BlockSpec((C, C), lambda b, i: (0, 0)),               # W_v
                pl.BlockSpec((C, C), lambda b, i: (0, 0)),               # W_proj
                pl.BlockSpec((1, C), lambda b, i: (0, 0)),               # b_proj
            ],
            out_specs=pl.BlockSpec((1, block_q, C), lambda b, i: (b, i, 0)),
        ),
        compiler_params=pltpu.CompilerParams(
            dimension_semantics=("parallel", "parallel"),
            vmem_limit_bytes=vmem_limit,
        ),
        cost_estimate=pl.CostEstimate(
            flops=flops,
            transcendentals=transcendentals,
            bytes_accessed=bytes_accessed,
        ),
    )(x, t, w_q, w_k, w_v, w_proj, b_proj2d)


def cross_attention_ref(x, t, w_q, w_kv, w_proj, b_proj, *, num_heads,
                        mxu_dtype=jnp.float32):
    """Pure-JAX reference mirroring the PyTorch forward.

    mxu_dtype=jnp.bfloat16 mirrors the kernel's mixed precision (bf16 operands at
    every matmul, f32 accumulation / softmax); mxu_dtype=jnp.float32 is the exact
    f32 torch-parity reference.
    """
    f32 = jnp.float32
    B, N_x, C = x.shape
    _, N_t, _ = t.shape
    hd = C // num_heads
    scale = hd ** (-0.5)
    c = lambda a: a.astype(mxu_dtype)

    q = jnp.einsum("bnc,ck->bnk", c(x), c(w_q), preferred_element_type=f32) * scale
    k = jnp.einsum("bnc,ck->bnk", c(t), c(w_kv[:, :C]), preferred_element_type=f32)
    v = jnp.einsum("bnc,ck->bnk", c(t), c(w_kv[:, C:]), preferred_element_type=f32)
    q = q.reshape(B, N_x, num_heads, hd).transpose(0, 2, 1, 3)
    k = k.reshape(B, N_t, num_heads, hd).transpose(0, 2, 1, 3)
    v = v.reshape(B, N_t, num_heads, hd).transpose(0, 2, 1, 3)

    s = jnp.einsum("bhqd,bhkd->bhqk", c(q), c(k), preferred_element_type=f32)
    p = jax.nn.softmax(s, axis=-1)
    p = jnp.where(jnp.isnan(p), 0.0, p)
    ctx = jnp.einsum("bhqk,bhkd->bhqd", c(p), c(v), preferred_element_type=f32)
    oc = ctx.transpose(0, 2, 1, 3).reshape(B, N_x, C)
    return jnp.einsum("bnc,ck->bnk", c(oc), c(w_proj), preferred_element_type=f32) + b_proj


if __name__ == "__main__":
    # Small shapes consistent with the module: dim divisible by num_heads=8.
    B, N_x, N_t, C, H = 2, 16, 8, 32, 8

    key = jax.random.PRNGKey(0)
    kx, kt, k1, k2, k3, k4 = jax.random.split(key, 6)

    x = jax.random.normal(kx, (B, N_x, C), dtype=jnp.float32)
    t = jax.random.normal(kt, (B, N_t, C), dtype=jnp.float32)

    # Deterministic parameter init (Linear layers; qkv_bias=False so no q/kv bias).
    w_q = jax.random.normal(k1, (C, C), dtype=jnp.float32) * (1.0 / np.sqrt(C))
    w_kv = jax.random.normal(k2, (C, 2 * C), dtype=jnp.float32) * (1.0 / np.sqrt(C))
    w_proj = jax.random.normal(k3, (C, C), dtype=jnp.float32) * (1.0 / np.sqrt(C))
    b_proj = jax.random.normal(k4, (C,), dtype=jnp.float32) * 0.02

    out = cross_attention(x, t, w_q, w_kv, w_proj, b_proj, num_heads=H)
    out = jax.block_until_ready(out)

    # Apples-to-apples check: reference using the same bf16-at-MXU / f32-accumulate recipe.
    ref_bf16 = cross_attention_ref(x, t, w_q, w_kv, w_proj, b_proj,
                                   num_heads=H, mxu_dtype=jnp.bfloat16)
    np.testing.assert_allclose(np.asarray(out), np.asarray(ref_bf16),
                               rtol=2e-2, atol=2e-2)

    # Sanity check vs. the exact-f32 torch-parity reference (bf16 MXU inputs =>
    # loosened tolerance).
    ref_f32 = cross_attention_ref(x, t, w_q, w_kv, w_proj, b_proj,
                                  num_heads=H, mxu_dtype=jnp.float32)
    np.testing.assert_allclose(np.asarray(out), np.asarray(ref_f32),
                               rtol=1e-1, atol=1e-1)

    print("KERNEL_OK")
</pallas_src>

<mosaic_0001>
module attributes {stable_mosaic.version = 11 : i64} {
  func.func @kernel(%arg0: i32, %arg1: i32, %arg2: memref<1x16x32xf32, #tpu.memory_space<vmem>>, %arg3: memref<1x8x32xf32, #tpu.memory_space<vmem>>, %arg4: memref<32x32xf32, #tpu.memory_space<vmem>>, %arg5: memref<32x32xf32, #tpu.memory_space<vmem>>, %arg6: memref<32x32xf32, #tpu.memory_space<vmem>>, %arg7: memref<32x32xf32, #tpu.memory_space<vmem>>, %arg8: memref<1x32xf32, #tpu.memory_space<vmem>>, %arg9: memref<1x16x32xf32, #tpu.memory_space<vmem>>) attributes {dimension_semantics = [#tpu.dimension_semantics<parallel>, #tpu.dimension_semantics<parallel>], iteration_bounds = array<i64: 2, 1>, scalar_prefetch = 0 : i64, scratch_operands = 0 : i64, tpu.core_type = #tpu.core_type<tc>, window_params = [{transform_indices = @transform_0, window_bounds = array<i64: 1, 16, 32>}, {transform_indices = @transform_1, window_bounds = array<i64: 1, 8, 32>}, {pipeline_mode = #tpu.pipeline_mode<synchronous>, transform_indices = @transform_2, window_bounds = array<i64: 32, 32>}, {pipeline_mode = #tpu.pipeline_mode<synchronous>, transform_indices = @transform_3, window_bounds = array<i64: 32, 32>}, {pipeline_mode = #tpu.pipeline_mode<synchronous>, transform_indices = @transform_4, window_bounds = array<i64: 32, 32>}, {pipeline_mode = #tpu.pipeline_mode<synchronous>, transform_indices = @transform_5, window_bounds = array<i64: 32, 32>}, {pipeline_mode = #tpu.pipeline_mode<synchronous>, transform_indices = @transform_6, window_bounds = array<i64: 1, 32>}, {transform_indices = @transform_7, window_bounds = array<i64: 1, 16, 32>}]} {
    %c0 = arith.constant 0 : index
    %c0_0 = arith.constant 0 : index
    %c0_1 = arith.constant 0 : index
    %0 = vector.load %arg2[%c0, %c0_0, %c0_1] : memref<1x16x32xf32, #tpu.memory_space<vmem>>, vector<1x16x32xf32>
    %1 = vector.shape_cast %0 : vector<1x16x32xf32> to vector<16x32xf32>
    %2 = arith.truncf %1 : vector<16x32xf32> to vector<16x32xbf16>
    %c0_2 = arith.constant 0 : index
    %c0_3 = arith.constant 0 : index
    %c0_4 = arith.constant 0 : index
    %3 = vector.load %arg3[%c0_2, %c0_3, %c0_4] : memref<1x8x32xf32, #tpu.memory_space<vmem>>, vector<1x8x32xf32>
    %4 = vector.shape_cast %3 : vector<1x8x32xf32> to vector<8x32xf32>
    %5 = arith.truncf %4 : vector<8x32xf32> to vector<8x32xbf16>
    %c0_5 = arith.constant 0 : index
    %c0_6 = arith.constant 0 : index
    %6 = vector.load %arg4[%c0_5, %c0_6] : memref<32x32xf32, #tpu.memory_space<vmem>>, vector<32x32xf32>
    %7 = arith.truncf %6 : vector<32x32xf32> to vector<32x32xbf16>
    %cst = arith.constant dense<0.000000e+00> : vector<16x32xf32>
    %8 = tpu.matmul %2, %7, %cst {dimension_numbers = #tpu.dot_dimension_numbers<[1], [0], [0], [1], [0, 0, 1, 1], [], []>} : vector<16x32xbf16>, vector<32x32xbf16>, vector<16x32xf32> -> vector<16x32xf32>
    %c0_7 = arith.constant 0 : index
    %c0_8 = arith.constant 0 : index
    %9 = vector.load %arg5[%c0_7, %c0_8] : memref<32x32xf32, #tpu.memory_space<vmem>>, vector<32x32xf32>
    %10 = arith.truncf %9 : vector<32x32xf32> to vector<32x32xbf16>
    %cst_9 = arith.constant dense<0.000000e+00> : vector<8x32xf32>
    %11 = tpu.matmul %5, %10, %cst_9 {dimension_numbers = #tpu.dot_dimension_numbers<[1], [0], [0], [1], [0, 0, 1, 1], [], []>} : vector<8x32xbf16>, vector<32x32xbf16>, vector<8x32xf32> -> vector<8x32xf32>
    %c0_10 = arith.constant 0 : index
    %c0_11 = arith.constant 0 : index
    %12 = vector.load %arg6[%c0_10, %c0_11] : memref<32x32xf32, #tpu.memory_space<vmem>>, vector<32x32xf32>
    %13 = arith.truncf %12 : vector<32x32xf32> to vector<32x32xbf16>
    %cst_12 = arith.constant dense<0.000000e+00> : vector<8x32xf32>
    %14 = tpu.matmul %5, %13, %cst_12 {dimension_numbers = #tpu.dot_dimension_numbers<[1], [0], [0], [1], [0, 0, 1, 1], [], []>} : vector<8x32xbf16>, vector<32x32xbf16>, vector<8x32xf32> -> vector<8x32xf32>
    %cst_13 = arith.constant 5.000000e-01 : f32
    %15 = vector.broadcast %cst_13 : f32 to vector<16x32xf32>
    %16 = arith.mulf %8, %15 : vector<16x32xf32>
    %17 = vector.shape_cast %16 : vector<16x32xf32> to vector<16x8x4xf32>
    %18 = tpu.transpose %17, [1, 0, 2] : vector<16x8x4xf32> -> vector<8x16x4xf32>
    %19 = arith.truncf %18 : vector<8x16x4xf32> to vector<8x16x4xbf16>
    %20 = vector.shape_cast %11 : vector<8x32xf32> to vector<8x8x4xf32>
    %21 = tpu.transpose %20, [1, 0, 2] : vector<8x8x4xf32> -> vector<8x8x4xf32>
    %22 = arith.truncf %21 : vector<8x8x4xf32> to vector<8x8x4xbf16>
    %23 = vector.shape_cast %14 : vector<8x32xf32> to vector<8x8x4xf32>
    %24 = tpu.transpose %23, [1, 0, 2] : vector<8x8x4xf32> -> vector<8x8x4xf32>
    %25 = arith.truncf %24 : vector<8x8x4xf32> to vector<8x8x4xbf16>
    "tpu.trace_start"() <{level = 10 : i32, message = "hqd,hkd->hqk"}> : () -> ()
    %cst_14 = arith.constant dense<0.000000e+00> : vector<8x16x8xf32>
    %26 = tpu.matmul %19, %22, %cst_14 {dimension_numbers = #tpu.dot_dimension_numbers<[2], [2], [1], [1], [0, 0, 0, 1, 1, 1], [0], [0]>} : vector<8x16x4xbf16>, vector<8x8x4xbf16>, vector<8x16x8xf32> -> vector<8x16x8xf32>
    "tpu.trace_stop"() : () -> ()
    %cst_15 = arith.constant dense<0xFF800000> : vector<8x16xf32>
    %27 = vector.multi_reduction <maximumf>, %26, %cst_15 [2] : vector<8x16x8xf32> to vector<8x16xf32>
    %28 = vector.shape_cast %27 : vector<8x16xf32> to vector<8x16x1xf32>
    %29 = vector.broadcast %28 : vector<8x16x1xf32> to vector<8x16x8xf32>
    %30 = arith.subf %26, %29 : vector<8x16x8xf32>
    %31 = math.exp %30 : vector<8x16x8xf32>
    %cst_16 = arith.constant dense<0.000000e+00> : vector<8x16xf32>
    %32 = vector.multi_reduction <add>, %31, %cst_16 [2] : vector<8x16x8xf32> to vector<8x16xf32>
    %33 = vector.shape_cast %32 : vector<8x16xf32> to vector<8x16x1xf32>
    %34 = tpu.reciprocal %33 {approx = true} : vector<8x16x1xf32> -> vector<8x16x1xf32>
    %35 = vector.broadcast %34 : vector<8x16x1xf32> to vector<8x16x8xf32>
    %36 = arith.mulf %31, %35 : vector<8x16x8xf32>
    %37 = arith.cmpf one, %36, %36 : vector<8x16x8xf32>
    %cst_17 = arith.constant 0.000000e+00 : f32
    %38 = vector.broadcast %cst_17 : f32 to vector<8x16x8xf32>
    %39 = arith.select %37, %38, %36 : vector<8x16x8xi1>, vector<8x16x8xf32>
    %40 = arith.truncf %39 : vector<8x16x8xf32> to vector<8x16x8xbf16>
    "tpu.trace_start"() <{level = 10 : i32, message = "hqk,hkd->hqd"}> : () -> ()
    %cst_18 = arith.constant dense<0.000000e+00> : vector<8x16x4xf32>
    %41 = tpu.matmul %40, %25, %cst_18 {dimension_numbers = #tpu.dot_dimension_numbers<[2], [1], [1], [2], [0, 0, 0, 1, 1, 2], [0], [0]>} : vector<8x16x8xbf16>, vector<8x8x4xbf16>, vector<8x16x4xf32> -> vector<8x16x4xf32>
    "tpu.trace_stop"() : () -> ()
    %42 = tpu.transpose %41, [1, 0, 2] : vector<8x16x4xf32> -> vector<16x8x4xf32>
    %43 = vector.shape_cast %42 : vector<16x8x4xf32> to vector<16x32xf32>
    %44 = arith.truncf %43 : vector<16x32xf32> to vector<16x32xbf16>
    %c0_19 = arith.constant 0 : index
    %c0_20 = arith.constant 0 : index
    %45 = vector.load %arg7[%c0_19, %c0_20] : memref<32x32xf32, #tpu.memory_space<vmem>>, vector<32x32xf32>
    %46 = arith.truncf %45 : vector<32x32xf32> to vector<32x32xbf16>
    %cst_21 = arith.constant dense<0.000000e+00> : vector<16x32xf32>
    %47 = tpu.matmul %44, %46, %cst_21 {dimension_numbers = #tpu.dot_dimension_numbers<[1], [0], [0], [1], [0, 0, 1, 1], [], []>} : vector<16x32xbf16>, vector<32x32xbf16>, vector<16x32xf32> -> vector<16x32xf32>
    %c0_22 = arith.constant 0 : index
    %c0_23 = arith.constant 0 : index
    %48 = vector.load %arg8[%c0_22, %c0_23] : memref<1x32xf32, #tpu.memory_space<vmem>>, vector<1x32xf32>
    %49 = vector.broadcast %48 : vector<1x32xf32> to vector<16x32xf32>
    %50 = arith.addf %47, %49 : vector<16x32xf32>
    %c0_24 = arith.constant 0 : index
    %c0_25 = arith.constant 0 : index
    %c0_26 = arith.constant 0 : index
    %51 = vector.load %arg9[%c0_24, %c0_25, %c0_26] : memref<1x16x32xf32, #tpu.memory_space<vmem>>, vector<1x16x32xf32>
    %52 = vector.shape_cast %51 : vector<1x16x32xf32> to vector<16x32xf32>
    %53 = vector.shape_cast %50 : vector<16x32xf32> to vector<1x16x32xf32>
    tpu.vector_store %arg9[%c0_24, %c0_25, %c0_26], %53 {strides = array<i32>} : memref<1x16x32xf32, #tpu.memory_space<vmem>>, vector<1x16x32xf32>,
    return
  }
  func.func @transform_0(%arg0: i32, %arg1: i32) -> (i32, i32, i32) {
    %c0_i32 = arith.constant 0 : i32
    %c0_i32_0 = arith.constant 0 : i32
    return %arg0, %arg1, %c0_i32 : i32, i32, i32
  }
  func.func @transform_1(%arg0: i32, %arg1: i32) -> (i32, i32, i32) {
    %c0_i32 = arith.constant 0 : i32
    %c0_i32_0 = arith.constant 0 : i32
    %c0_i32_1 = arith.constant 0 : i32
    return %arg0, %c0_i32, %c0_i32_0 : i32, i32, i32
  }
  func.func @transform_2(%arg0: i32, %arg1: i32) -> (i32, i32) {
    %c0_i32 = arith.constant 0 : i32
    %c0_i32_0 = arith.constant 0 : i32
    %c0_i32_1 = arith.constant 0 : i32
    return %c0_i32, %c0_i32_0 : i32, i32
  }
  func.func @transform_3(%arg0: i32, %arg1: i32) -> (i32, i32) {
    %c0_i32 = arith.constant 0 : i32
    %c0_i32_0 = arith.constant 0 : i32
    %c0_i32_1 = arith.constant 0 : i32
    return %c0_i32, %c0_i32_0 : i32, i32
  }
  func.func @transform_4(%arg0: i32, %arg1: i32) -> (i32, i32) {
    %c0_i32 = arith.constant 0 : i32
    %c0_i32_0 = arith.constant 0 : i32
    %c0_i32_1 = arith.constant 0 : i32
    return %c0_i32, %c0_i32_0 : i32, i32
  }
  func.func @transform_5(%arg0: i32, %arg1: i32) -> (i32, i32) {
    %c0_i32 = arith.constant 0 : i32
    %c0_i32_0 = arith.constant 0 : i32
    %c0_i32_1 = arith.constant 0 : i32
    return %c0_i32, %c0_i32_0 : i32, i32
  }
  func.func @transform_6(%arg0: i32, %arg1: i32) -> (i32, i32) {
    %c0_i32 = arith.constant 0 : i32
    %c0_i32_0 = arith.constant 0 : i32
    %c0_i32_1 = arith.constant 0 : i32
    return %c0_i32, %c0_i32_0 : i32, i32
  }
  func.func @transform_7(%arg0: i32, %arg1: i32) -> (i32, i32, i32) {
    %c0_i32 = arith.constant 0 : i32
    %c0_i32_0 = arith.constant 0 : i32
    return %arg0, %arg1, %c0_i32 : i32, i32, i32
  }
}

</mosaic_0001>

<bundles_post_ra>
// kernel: tpu_custom_call.1
= control target key start
LH: loop header
LB: loop body
LE: loop exit
PB: predicated region body
PF: predicated region fallthrough
CT: control target
= control target key end

     0   :  { %s5472_s0 = inlined_call_operand.hbm [shape: f32[2,16,32], index: 0, kind: input, shape index: {}]   ;;  %s5473_s1 = inlined_call_operand.hbm [shape: f32[2,8,32], index: 1, kind: input, shape index: {}]   ;;  %s5474_s2 = inlined_call_operand.hbm [shape: f32[32,32], index: 2, kind: input, shape index: {}]   ;;  %s5475_s3 = inlined_call_operand.hbm [shape: f32[32,32], index: 3, kind: input, shape index: {}]   ;;  %s5476_s4 = inlined_call_operand.hbm [shape: f32[32,32], index: 4, kind: input, shape index: {}]   ;;  %s5477_s5 = inlined_call_operand.hbm [shape: f32[32,32], index: 5, kind: input, shape index: {}]   ;;  %s5478_s6 = inlined_call_operand.vmem [shape: f32[1,32], index: 6, kind: input, shape index: {}]   ;;  %s5479_s7 = inlined_call_operand.hbm [shape: f32[2,16,32], index: 7, kind: output, shape index: {}]  }
   0x1   :  { %5488 = sst [smem:[#allocation22_spill]] %s5472_s0 }
   0x2   :  { %5489 = sst [smem:[#allocation23_spill]] %s5474_s2 }
   0x3   :  { %5490 = sst [smem:[#allocation24_spill]] %s5475_s3 }
   0x4   :  { %5491 = sst [smem:[#allocation25_spill]] %s5476_s4 }
   0x5   :  { %5492 = sst [smem:[#allocation26_spill]] %s5479_s7 }
   0x6   :  { %12 = vsyncpa [#allocation3], 0 }
   0x7   :  { %14 = vsyncpa [#allocation3 + $0x1], 0 }
   0x8   :  { %15 = vsyncpa [#allocation6], 0 }
   0x9   :  { %17 = vsyncpa [#allocation6 + $0x1], 0 }
   0xa   :  { %18 = vsyncpa [#allocation9], 0 }
   0xb   :  { %19 = vsyncpa [#allocation12], 0 }
   0xc   :  { %20 = vsyncpa [#allocation4], 0 }
   0xd   :  { %22 = vsyncpa [#allocation4 + $0x1], 0  ;;  %s4417_s24 = smov 0   ;;  %s4419_s25 = smov 0  }
   0xe   :  { %s4421_s26 = smov 0   ;;  %s4423_s27 = smov 0  }
   0xf   :  { %s4425_s28 = smov 0   ;;  %s4427_s29 = smov 0  }
  0x10 LB: > { %5493 = sst [smem:[#allocation20_spill]] %s4327_s24  ;;  %s4448_s30 = sadd.s32 4294967295, %s4347_s29   ;;  %s4347_s29 = sphi %s4427_s29, %s28_s29   ;;  %s4343_s28 = sphi %s4425_s28, %s5527_s28   ;;  %s4339_s27 = sphi %s4423_s27, %s5526_s27   ;;  %s4335_s26 = sphi %s4421_s26, %s5525_s26   ;;  %s4331_s25 = sphi %s4419_s25, %s5524_s25   ;;  %s4327_s24 = sphi %s4417_s24, %s5523_s24  }
  0x11   : > { %s3581_s8 = sadd.s32 4294967294, %s4347_s29   ;;  %p62_p0 = scmp.ne.s32.totalorder %s4331_s25, %s4327_s24 }
  0x12   : > { %p5480_p1 = scmp.eq.s32.totalorder %s4448_s30, 0  ;;  %p225_p3 = scmp.eq.s32.totalorder %s3581_s8, 1 }
  0x13   : > { %p3582_p5 = scmp.ge.s32.totalorder %s4347_s29, 1  ;;  %p232_p7 = scmp.lt.s32.totalorder %s4347_s29, 3 }
  0x14   : > { %p4457_p4 = por %p5480_p1, %p62_p0  ;;  %p4462_p6 = por %p225_p3, %p62_p0 }
  0x15   : > { %p4467_p8 = pnand %p3582_p5, %p232_p7  ;;  %s4349_s12 = smov [#allocation7]  }
  0x16   : > { %s5494_s9 = scalar_select %p4457_p4, 1, 0 }
  0x17   : > { %s5495_s10 = scalar_select %p4462_p6, 1, 0 }
  0x18   : > { %s5497_s11 = scalar_select %p4467_p8, 1, 0 }
  0x19   : > { %5496 = sst [smem:[#allocation21_spill]] %s5495_s10  ;;  %s244_s13 = sshll.u32 %s4349_s12, 4  ;;  %s4471_s13 = int_to_ptr.vmem [resolvable:$true] %s244_s13 }
  0x1a   : > { %p3871_p9 = pneg %p4467_p8  ;;  %s4350_s15 = smov [#allocation8]  }
  0x1b   : > { %s257_s16 = sshll.u32 %s4350_s15, 4  ;;  %s4351_s17 = smov [#allocation10]   ;;  %s4482_s16 = int_to_ptr.vmem [resolvable:$true] %s257_s16 }
  0x1c   : > { %p4478_p11 = pnand %p3871_p9, %p5480_p1  ;;  %s4484_s18 = sshll.u32 %s4351_s17, 4  ;;  %s271_s18 = int_to_ptr.vmem [resolvable:$true] %s4484_s18 }
  0x1d   : > { %s5499_s2 = sld [smem:[#allocation23_spill]] }
  0x1e   : > { %p4494_p13 = pneg %p4478_p11 }
  0x23   : > { %s4077_s21 = scalar_lea.hbm %s5499_s2, 512 }
  0x24   : > { %p4078_p12 = scmp.ne.s32.totalorder %s5499_s2, %s4077_s21  ;;  %p4084_p5 = scmp.lt.u32.totalorder %s4077_s21, %s5499_s2 }
  0x26   : > { %p4080_p0 = pnand %p4494_p13, %p4078_p12 }
  0x28   : > { %p4081_p3 = pneg %p4080_p0 }
  0x2a   : > { %p4086_p7 = pnand %p4084_p5, %p4081_p3 }
  0x2c   : > { %4089 = shalt.err (!%p4086_p7)
}
  0x2d   : > { %s4090_s17 = scalar_lea.vmem %s4471_s13, 512  ;;  %p4098_p2 = scmp.lt.s32.totalorder %s4471_s13, %s4471_s13 }
  0x2e   : > { %p4091_p9 = scmp.ne.s32.totalorder %s4471_s13, %s4090_s17  ;;  %p4099_p6 = scmp.lt.s32.totalorder %s4090_s17, %s4090_s17 }
  0x30   : > { %p4093_p10 = pnand %p4091_p9, %p4494_p13  ;;  %p4100_p12 = por %p4099_p6, %p4098_p2 }
  0x32   : > { %p4094_p1 = pneg %p4093_p10 }
  0x34   : > { %p4101_p0 = pnand %p4100_p12, %p4094_p1 }
  0x36   : > { %4104 = shalt.err (!%p4101_p0)
}
  0x37   : > { %s5486_s19 = smov 128   ;;  %s4353_s20 = smov 8  }
  0x38   : > { %3874 = dma.hbm_to_vmem [thread:$0]  (!%p4478_p11), %s5499_s2, 512, %s4471_s13, [#allocation6], %s5486_s19, %s5486_s19, %s4353_s20  }
  0x39   : > { %s5501_s3 = sld [smem:[#allocation24_spill]] }
  0x3f   : > { %s4105_s15 = scalar_lea.hbm %s5501_s3, 512 }
  0x40   : > { %p4106_p1 = scmp.ne.s32.totalorder %s5501_s3, %s4105_s15  ;;  %p4112_p10 = scmp.lt.u32.totalorder %s4105_s15, %s5501_s3 }
  0x42   : > { %p4108_p2 = pnand %p4106_p1, %p4494_p13 }
  0x44   : > { %p4109_p6 = pneg %p4108_p2 }
  0x46   : > { %p4114_p3 = pnand %p4112_p10, %p4109_p6 }
  0x48   : > { %4117 = shalt.err (!%p4114_p3)
}
  0x49   : > { %s4118_s13 = scalar_lea.vmem %s4482_s16, 512  ;;  %p4126_p12 = scmp.lt.s32.totalorder %s4482_s16, %s4482_s16 }
  0x4a   : > { %p4119_p5 = scmp.ne.s32.totalorder %s4482_s16, %s4118_s13  ;;  %p4127_p0 = scmp.lt.s32.totalorder %s4118_s13, %s4118_s13 }
  0x4c   : > { %p4121_p7 = pnand %p4119_p5, %p4494_p13  ;;  %p4128_p1 = por %p4127_p0, %p4126_p12 }
  0x4e   : > { %p4122_p9 = pneg %p4121_p7 }
  0x50   : > { %p4129_p2 = pnand %p4128_p1, %p4122_p9 }
  0x52   : > { %4132 = shalt.err (!%p4129_p2)
}
  0x53   : > { %3877 = dma.hbm_to_vmem [thread:$0]  (!%p4478_p11), %s5501_s3, 512, %s4482_s16, [#allocation9], %s5486_s19, %s5486_s19, %s4353_s20  }
  0x54   : > { %s5502_s4 = sld [smem:[#allocation25_spill]] }
  0x5a   : > { %s4133_s22 = scalar_lea.hbm %s5502_s4, 512 }
  0x5b   : > { %p4134_p6 = scmp.ne.s32.totalorder %s5502_s4, %s4133_s22  ;;  %p4140_p5 = scmp.lt.u32.totalorder %s4133_s22, %s5502_s4 }
  0x5d   : > { %p4136_p10 = pnand %p4134_p6, %p4494_p13 }
  0x5f   : > { %p4137_p3 = pneg %p4136_p10 }
  0x61   : > { %p4142_p7 = pnand %p4140_p5, %p4137_p3 }
  0x63   : > { %4145 = shalt.err (!%p4142_p7)
}
  0x64   : > { %s4146_s13 = scalar_lea.vmem %s271_s18, 512  ;;  %p4154_p1 = scmp.lt.s32.totalorder %s271_s18, %s271_s18 }
  0x65   : > { %p4147_p9 = scmp.ne.s32.totalorder %s271_s18, %s4146_s13  ;;  %p4155_p2 = scmp.lt.s32.totalorder %s4146_s13, %s4146_s13 }
  0x67   : > { %p4149_p12 = pnand %p4147_p9, %p4494_p13  ;;  %p4156_p4 = por %p4155_p2, %p4154_p1 }
  0x69   : > { %p4150_p0 = pneg %p4149_p12 }
  0x6b   : > { %p4157_p8 = pnand %p4156_p4, %p4150_p0 }
  0x6d   : > { %4160 = shalt.err (!%p4157_p8)
}
  0x6e   : > { %3880 = dma.hbm_to_vmem [thread:$0]  (!%p4478_p11), %s5502_s4, 512, %s271_s18, [#allocation9], %s5486_s19, %s5486_s19, %s4353_s20  }
  0x6f   : > { %s4354_s24 = smov [#allocation11]   ;;  %s4161_s23 = scalar_lea.hbm %s5477_s5, 512 }
  0x70   : > { %s283_s10 = sshll.u32 %s4354_s24, 4  ;;  %p4162_p4 = scmp.ne.s32.totalorder %s5477_s5, %s4161_s23  ;;  %s284_s10 = int_to_ptr.vmem [resolvable:$true] %s283_s10 }
  0x71   : > { %p4168_p10 = scmp.lt.u32.totalorder %s4161_s23, %s5477_s5 }
  0x72   : > { %p4164_p8 = pnand %p4162_p4, %p4494_p13 }
  0x74   : > { %p4165_p6 = pneg %p4164_p8 }
  0x76   : > { %p4170_p3 = pnand %p4168_p10, %p4165_p6 }
  0x78   : > { %4173 = shalt.err (!%p4170_p3)
}
  0x79   : > { %s4174_s18 = scalar_lea.vmem %s284_s10, 512  ;;  %p4182_p12 = scmp.lt.s32.totalorder %s284_s10, %s284_s10 }
  0x7a   : > { %p4175_p5 = scmp.ne.s32.totalorder %s284_s10, %s4174_s18  ;;  %p4183_p0 = scmp.lt.s32.totalorder %s4174_s18, %s4174_s18 }
  0x7c   : > { %p4177_p7 = pnand %p4175_p5, %p4494_p13  ;;  %p4184_p1 = por %p4183_p0, %p4182_p12 }
  0x7e   : > { %p4178_p9 = pneg %p4177_p7 }
  0x80   : > { %p4185_p2 = pnand %p4184_p1, %p4178_p9 }
  0x82   : > { %4188 = shalt.err (!%p4185_p2)
}
  0x83   : > { %3883 = dma.hbm_to_vmem [thread:$0]  (!%p4478_p11), %s5477_s5, 512, %s284_s10, [#allocation12], %s5486_s19, %s5486_s19, %s4353_s20  }
  0x84   : > { %s40_s8 = sadd.s32 1, %s4343_s28  ;;  %s49_s14 = sadd.s32 1, %s4335_s26 }
  0x85   : > { %p42_p13 = scmp.ge.s32.totalorder %s40_s8, 2  ;;  %p56_p4 = scmp.ne.s32.totalorder %s4335_s26, %s4331_s25 }
  0x86   : > { %p57_p8 = scmp.eq.s32.totalorder %s4347_s29, 0  ;;  %p3899_p6 = scmp.lt.s32.totalorder %s4347_s29, 2 }
  0x87   : > { %s5529_s8 = smov (%p42_p13, %s40_s8), 0  ;;  %p5503_p3 = scmp.eq.s32.totalorder %s4448_s30, 1 }
  0x88   : > { %p58_p10 = por %p57_p8, %p56_p4  ;;  %s44_s21 = ssub.s32 %s4343_s28, %s5529_s8 }
  0x89   : > { %p4597_p5 = por %p5503_p3, %p56_p4  ;;  %s4604_s22 = sand.u32 1, %s4335_s26  }
  0x8a   : > { %p47_p11 = scmp.eq.s32.totalorder %s44_s21, 0  ;;  %s3588_s10 = sshll.u32 %s4604_s22, 4 }
  0x8b   : > { %s5504_s24 = scalar_select %p4597_p5, 1, 0 }
  0x8c   : > { %s3675_s23 = sshll.u32 %s4343_s28, 8  ;;  %s5505_s0 = sld [smem:[#allocation22_spill]] }
  0x8d   : > { %s4609_s12 = scalar_select %p47_p11, %s4335_s26, %s49_s14  }
  0x8e   : > { %s304_s18 = scalar_lea.vmem [#allocation2], %s3588_s10  ;;  %p4618_p7 = pnand %p3899_p6, %p58_p10 }
  0x8f   : > { %s313_s16 = sshll.u32 %s304_s18, 4  ;;  %s301_s21 = scalar_lea.sflag [#allocation3], %s4604_s22  ;;  %s4622_s16 = int_to_ptr.vmem [resolvable:$true] %s313_s16 }
  0x90   : > { %p4191_p12 = pneg %p4618_p7 }
  0x92   : > { %s4614_s13 = scalar_lea.hbm %s5505_s0, %s3675_s23  ;;  %s4194_s17 = scalar_lea.hbm %s5505_s0, 512 }
  0x93   : > { %s4189_s15 = scalar_lea.hbm %s4614_s13, 256  ;;  %p4195_p2 = scmp.lt.u32.totalorder %s4614_s13, %s5505_s0 }
  0x94   : > { %p4190_p9 = scmp.ne.s32.totalorder %s4614_s13, %s4189_s15  ;;  %p4196_p13 = scmp.lt.u32.totalorder %s4194_s17, %s4189_s15 }
  0x95   : > { %p4198_p8 = scmp.lt.u32.totalorder %s4189_s15, %s4614_s13 }
  0x96   : > { %p4192_p0 = pnand %p4191_p12, %p4190_p9  ;;  %p4197_p4 = por %p4196_p13, %p4195_p2 }
  0x98   : > { %p4193_p1 = pneg %p4192_p0  ;;  %p4199_p6 = por %p4198_p8, %p4197_p4 }
  0x9a   : > { %p4200_p10 = pnand %p4199_p6, %p4193_p1 }
  0x9c   : > { %4203 = shalt.err (!%p4200_p10)
}
  0x9d   : > { %s4204_s14 = scalar_lea.vmem %s4622_s16, 256  ;;  %s4355_s10 = smov [#allocation2]  }
  0x9e   : > { %p4205_p3 = scmp.ne.s32.totalorder %s4622_s16, %s4204_s14  ;;  %s4209_s23 = sshll.u32 %s4355_s10, 4  ;;  %s4210_s23 = int_to_ptr.vmem [resolvable:$false] %s4209_s23 }
  0x9f   : > { %s4211_s19 = scalar_lea.vmem %s4210_s23, 512  ;;  %p4212_p0 = scmp.lt.s32.totalorder %s4622_s16, %s4210_s23 }
  0xa0   : > { %p4207_p11 = pnand %p4205_p3, %p4191_p12  ;;  %p4213_p2 = scmp.lt.s32.totalorder %s4211_s19, %s4204_s14 }
  0xa2   : > { %p4208_p9 = pneg %p4207_p11  ;;  %p4214_p13 = por %p4213_p2, %p4212_p0 }
  0xa4   : > { %p4215_p4 = pnand %p4214_p13, %p4208_p9 }
  0xa6   : > { %4218 = shalt.err (!%p4215_p4)
}
  0xa7   : > { %s5507_s15 = smov 128   ;;  %s3591_s17 = sshll.u32 %s4604_s22, 3 }
  0xa8   : > { %3887 = dma.hbm_to_vmem [thread:$0]  (!%p4618_p7), %s4614_s13, 256, %s4622_s16, %s301_s21, %s5507_s15, %s5507_s15, %s4353_s20  }
  0xa9   : > { %s3592_s18 = sshll.u32 %s4343_s28, 7  ;;  %s327_s19 = scalar_lea.vmem [#allocation5], %s3591_s17 }
  0xaa   : > { %s4661_s23 = scalar_lea.hbm %s5473_s1, %s3592_s18  ;;  %s334_s0 = sshll.u32 %s327_s19, 4  ;;  %s335_s0 = int_to_ptr.vmem [resolvable:$true] %s334_s0 }
  0xab   : > { %s5508_s2 = sand.u32 1, %s4347_s29   ;;  %s4219_s4 = scalar_lea.hbm %s4661_s23, 128 }
  0xac   : > { %s324_s3 = scalar_lea.sflag [#allocation6], %s5508_s2  ;;  %p4220_p1 = scmp.ne.s32.totalorder %s4661_s23, %s4219_s4 }
  0xad   : > { %s4224_s13 = scalar_lea.hbm %s5473_s1, 256  ;;  %p4225_p10 = scmp.lt.u32.totalorder %s4661_s23, %s5473_s1 }
  0xae   : > { %p4222_p8 = pnand %p4220_p1, %p4191_p12  ;;  %p4226_p3 = scmp.lt.u32.totalorder %s4224_s13, %s4219_s4 }
  0xaf   : > { %p4228_p9 = scmp.lt.u32.totalorder %s4219_s4, %s4661_s23 }
  0xb0   : > { %p4223_p6 = pneg %p4222_p8  ;;  %p4227_p11 = por %p4226_p3, %p4225_p10 }
  0xb2   : > { %p4229_p0 = por %p4228_p9, %p4227_p11 }
  0xb4   : > { %p4230_p2 = pnand %p4229_p0, %p4223_p6 }
  0xb6   : > { %4233 = shalt.err (!%p4230_p2)
}
  0xb7   : > { %s4234_s2 = scalar_lea.vmem %s335_s0, 128  ;;  %s4356_s15 = smov [#allocation5]  }
  0xb8   : > { %p4235_p13 = scmp.ne.s32.totalorder %s335_s0, %s4234_s2  ;;  %s4239_s17 = sshll.u32 %s4356_s15, 4  ;;  %s4240_s17 = int_to_ptr.vmem [resolvable:$false] %s4239_s17 }
  0xb9   : > { %s4241_s18 = scalar_lea.vmem %s4240_s17, 256  ;;  %p4242_p8 = scmp.lt.s32.totalorder %s335_s0, %s4240_s17 }
  0xba   : > { %p4237_p4 = pnand %p4235_p13, %p4191_p12  ;;  %p4243_p5 = scmp.lt.s32.totalorder %s4241_s18, %s4234_s2 }
  0xbc   : > { %p4238_p1 = pneg %p4237_p4  ;;  %p4244_p3 = por %p4243_p5, %p4242_p8 }
  0xbe   : > { %p4245_p10 = pnand %p4244_p3, %p4238_p1 }
  0xc0   : > { %4248 = shalt.err (!%p4245_p10)
}
  0xc1   : > { %3890 = dma.hbm_to_vmem [thread:$0]  (!%p4618_p7), %s4661_s23, 128, %s335_s0, %s324_s3  }
  0xc2   : > { %p5509_p6 = scmp.ne.s32.totalorder %s5497_s11, 0 }
  0xc3   : > { %s4687_s4 = sand.u32 (!%p5509_p6), 1, %s4331_s25   ;;  %p5510_p5 = scmp.ne.s32.totalorder (!%p5509_p6), %s5494_s9, 0 }
  0xc4   : > { %343 = sbr.rel (%p5509_p6) target bundleno = 1806 (0x70e), region = 48  ;;  %s3594_s14 = sshll.u32 (!%p5509_p6), %s4687_s4, 4 }
  0xc5   : > { %s346_s10 = scalar_lea.sflag (!%p5509_p6), [#allocation3], %s4687_s4  ;;  %s4693_s19 = scalar_lea.vmem (!%p5509_p6), [#allocation2], %s3594_s14 }
  0xcb   : > { %4302 = dma.done.wait (%p5510_p5), %s346_s10, 256  }
  0xcc   : > { %4304 = vsyncadd (%p5510_p5), %s346_s10, 4294967040  ;;  %s354_s0 = sand.u32 1, %s4448_s30   ;;  %s3595_s3 = sshll.u32 %s4687_s4, 3 }
  0xcd   : > { %s355_s11 = scalar_lea.sflag [#allocation6], %s354_s0  ;;  %s358_s7 = scalar_lea.vmem [#allocation5], %s3595_s3 }
  0xce   : > { %4306 = dma.done.wait (%p5510_p5), %s355_s11, 128  }
  0xcf   : > { %4308 = vsyncadd (%p5510_p5), %s355_s11, 4294967168  ;;  %p5511_p7 = scmp.eq.s32.totalorder %s4448_s30, 0 }
  0xd1   : > { %4310 = dma.done.wait (%p5511_p7), [#allocation6], 512   ;;  %p5512_p12 = pmov %p5511_p7 }
  0xd2   : > { %p5513_p11 = pmov %p5511_p7 }
  0xd3   : > { %4312 = vsyncadd (%p5512_p12), [#allocation6], 4294966784 }
  0xd4   : > { %4314 = dma.done.wait (%p5513_p11), [#allocation9], 1024   ;;  %p5514_p9 = pmov %p5511_p7 }
  0xd5   : > { %p5515_p0 = pmov %p5511_p7 }
  0xd6   : > { %4316 = vsyncadd (%p5514_p9), [#allocation9], 4294966272 }
  0xd7   : > { %4318 = dma.done.wait (%p5515_p0), [#allocation12], 512   ;;  %p5516_p2 = pmov %p5515_p0 }
  0xd8   : > { %v4357_v0 = vmov 0.0   ;;  %vm4358_vm0 = vmmov 0   ;;  %v469_v1 = vld [vmem:[#allocation8] sm:$0xff]  ;;  %v470_v2 = vld [vmem:[#allocation8 + $0x8] sm:$0xff]  ;;  %v471_v3 = vld [vmem:[#allocation8 + $0x10] sm:$0xff]  ;;  %vm424_vm1 = vcmask 261120   ;;  %v615_v40 = vlaneseq }
  0xd9   : > { %4320 = vsyncadd (%p5516_p2), [#allocation12], 4294966784  ;;  %3729 = vmatprep.subr.bf16.mxu1 %v4357_v0  ;;  %3733 = vmatprep.mubr.msk.bf16.mxu1 %vm4358_vm0, %v4357_v0  ;;  %v473_v4 = vpack.c.bf16 %v470_v2, %v469_v1  ;;  %v472_v5 = vld [vmem:[#allocation8 + $0x18] sm:$0xff]  ;;  %v418_v6 = vld [vmem:[#allocation7] sm:$0xff]  ;;  %s4359_s30 = smov 116   ;;  %s4360_s9 = smov 124  }
  0xda   : > { %3721 = vmatprep.subr.bf16.mxu0 %v4357_v0  ;;  %3725 = vmatprep.mubr.msk.bf16.mxu0 %vm4358_vm0, %v4357_v0  ;;  %v419_v7 = vld [vmem:[#allocation7 + $0x8] sm:$0xff]  ;;  %v420_v8 = vld [vmem:[#allocation7 + $0x10] sm:$0xff]  ;;  %v421_v9 = vld [vmem:[#allocation7 + $0x18] sm:$0xff]  ;;  %v474_v10 = vpack.c.bf16 %v472_v5, %v471_v3  ;;  %s4361_s23 = smov 112   ;;  %s4362_s20 = smov 120   ;;  %v616_v44 = vshrl.u32 %v615_v40, 7 }
  0xdb   : > { %3730 = vmatpush3.bf16.msra.mxu1 %v473_v4  ;;  %v416_v11 = vld [vmem:[%s358_s7] sm:$0xff]  ;;  %v422_v12 = vpack.c.bf16 %v419_v7, %v418_v6  ;;  %v423_v13 = vpack.c.bf16 %v421_v9, %v420_v8  ;;  %v414_v15 = vld [vmem:[%s4693_s19 + $0x8] sm:$0xff]  ;;  %v518_v17 = vld [vmem:[#allocation10] sm:$0xff]  ;;  %s4363_s22 = smov 104   ;;  %s4364_s13 = smov 108   ;;  %vm1766_vm2 = vcmask 31744  }
  0xdc   : > { %3731 = vmatprep.subr.bf16.mxu1 %v4357_v0  ;;  %v413_v14 = vld [vmem:[%s4693_s19] sm:$0xff]  ;;  %v417_v16 = vpack.c.bf16 %v416_v11, %v416_v11  ;;  %v519_v18 = vld [vmem:[#allocation10 + $0x8] sm:$0xff]  ;;  %v521_v22 = vld [vmem:[#allocation10 + $0x18] sm:$0xff]  ;;  %s4365_s16 = smov 100   ;;  %v4366_v38 = vmov 1983009808  }
  0xdd   : > { %3722 = vmatpush3.bf16.msra.mxu0 %v422_v12  ;;  %v415_v19 = vpack.c.bf16 %v414_v15, %v413_v14  ;;  %v522_v20 = vpack.c.bf16 %v519_v18, %v518_v17  ;;  %v520_v21 = vld [vmem:[#allocation10 + $0x10] sm:$0xff]  ;;  %v613_v39 = vunpack.c.l.s4 %v4366_v38  ;;  %v4367_v41 = vmov 1934713408   ;;  %s4368_s21 = smov 8   ;;  %s4369_s2 = smov 4  }
  0xde   : > { %3723 = vmatprep.subr.bf16.mxu0 %v4357_v0  ;;  %v523_v23 = vpack.c.bf16 %v521_v22, %v520_v21  ;;  %v677_v42 = vunpack.c.l.s4 %v4367_v41  ;;  %vm2363_vm3 = vcmask 1043456   ;;  %vm2143_vm4 = vcmask 64512   ;;  %s4370_s15 = smov 12   ;;  %s4371_s17 = smov 20  }
  0xdf   : > { %3732 = vmatpush3.bf16.msra.mxu1 %v474_v10  ;;  %v614_v43 = vunpack.c.0.s8 %v613_v39  ;;  %s4372_s18 = smov 16   ;;  %s4373_s10 = smov 28  }
  0xe0   : > { %3745 = vmatprep.subr.bf16.mxu1 %v4357_v0  ;;  %v678_v47 = vunpack.c.0.s8 %v677_v42  ;;  %s4374_s19 = smov 24   ;;  %s409_s11 = scalar_lea.vmem [#allocation13], %s3594_s14 }
  0xe1   : > { %3724 = vmatpush3.bf16.msra.mxu0 %v423_v13  ;;  %v4794_v48 = vsub.s32 %v614_v43, %v616_v44  ;;  %s3432_s7 = sshll.u32 %s409_s11, 4  ;;  %p5518_p4 = scmp.ne.s32.totalorder %s5504_s24, 0  ;;  %s5415_s7 = int_to_ptr.vmem [resolvable:$true] %s3432_s7 }
  0xe2   : > { %3734 = vmatmul.mubr.msk.bf16.vlgmr.msra.gmra.mrb[0].mxu1 %vm424_vm1, %v417_v16  ;;  %3737 = vmatprep.subr.bf16.mxu0 %v4357_v0  ;;  %v4800_v55 = vsub.s32 %v678_v47, %v616_v44 }
  0xe3   : > { %3747 = vmatprep.mubr.msk.bf16.mxu1 %vm4358_vm0, %v4357_v0 }
  0xe4   : > { %3726 = vmatmul.mubr.msk.bf16.vlgmr.msra.gmra.mrb[0].mxu0 %vm424_vm1, %v415_v19 }
  0xe5   : > { %3738 = vmatpush3.bf16.msra.mxu0 %v522_v20  ;;  %3741 = vmatprep.mubr.msk.bf16.mxu0 %vm4358_vm0, %v4357_v0 }
  0xe6   : > { %3739 = vmatprep.subr.bf16.mxu0 %v4357_v0 }
  0xe9   : > { %3740 = vmatpush3.bf16.msra.mxu0 %v523_v23 }
  0xea   : > { %3751 = vmatprep.subr.bf16.mxu0 %v4357_v0 }
  0xec   : > { %3742 = vmatmul.mubr.msk.bf16.vlgmr.msra.gmra.mrb[4].mxu0 %vm424_vm1, %v417_v16 }
  0xed   : > { %3753 = vmatprep.mubr.msk.bf16.mxu0 %vm4358_vm0, %v4357_v0 }
 0x1b5   : > { %v4740_v24 = vpop.f32.mrb[0].mxu1 }
 0x1b6   : > { %1169 = vrot.lane.b32.xlu1 %v4740_v24, %s4359_s30  ;;  %1163 = vrot.lane.b32.xlu0 %v4740_v24, %s4360_s9  ;;  %v3735_v25 = vpop.f32.mrb[1].mxu1 }
 0x1b7   : > { %v515_v26 = vpop.f32.mrb[2].mxu1  ;;  %v462_v27 = vpop.f32.mrb[0].mxu0 }
 0x1b8   : > { %v3736_v28 = vpop.f32.mrb[3].mxu1  ;;  %v3727_v29 = vpop.f32.mrb[1].mxu0  ;;  %v4753_v32 = vmul.f32 0.5, %v462_v27 }
 0x1b9   : > { %v465_v30 = vpop.f32.mrb[2].mxu0 }
 0x1ba   : > { %1172 = vrot.lane.b32.xlu1 %v4740_v24, %s4361_s23  ;;  %1166 = vrot.lane.b32.xlu0 %v4740_v24, %s4362_s20  ;;  %v3728_v31 = vpop.f32.mrb[3].mxu0  ;;  %v4759_v33 = vmul.f32 0.5, %v465_v30 }
 0x1be   : > { %1178 = vrot.lane.b32.xlu1 %v4740_v24, %s4363_s22  ;;  %1175 = vrot.lane.b32.xlu0 %v4740_v24, %s4364_s13 }
 0x1bf   : > { %v4785_v34 = vpop.f32.mrb[4].mxu0 }
 0x1c0   : > { %v3743_v35 = vpop.f32.mrb[5].mxu0 }
 0x1c1   : > { %v561_v36 = vpop.f32.mrb[6].mxu0 }
 0x1c2   : > { %1181 = vrot.lane.b32.xlu0 %v4740_v24, %s4365_s16  ;;  %568 = vrot.lane.b32.xlu1 %v4753_v32, %s4360_s9  ;;  %v3744_v37 = vpop.f32.mrb[7].mxu0 }
 0x1c6   : > { %574 = vrot.lane.b32.xlu1 %v4753_v32, %s4362_s20  ;;  %570 = vrot.lane.b32.xlu0 %v4759_v33, %s4360_s9 }
 0x1ca   : > { %580 = vrot.lane.b32.xlu1 %v4753_v32, %s4359_s30  ;;  %576 = vrot.lane.b32.xlu0 %v4759_v33, %s4362_s20 }
 0x1ce   : > { %586 = vrot.lane.b32.xlu1 %v4753_v32, %s4361_s23  ;;  %582 = vrot.lane.b32.xlu0 %v4759_v33, %s4359_s30 }
 0x1d2   : > { %592 = vrot.lane.b32.xlu1 %v4753_v32, %s4364_s13  ;;  %588 = vrot.lane.b32.xlu0 %v4759_v33, %s4361_s23 }
 0x1d6   : > { %598 = vrot.lane.b32.xlu1 %v4753_v32, %s4363_s22  ;;  %594 = vrot.lane.b32.xlu0 %v4759_v33, %s4364_s13 }
 0x1da   : > { %604 = vrot.lane.b32.xlu1 %v4753_v32, %s4365_s16  ;;  %600 = vrot.lane.b32.xlu0 %v4759_v33, %s4363_s22 }
 0x1de   : > { %606 = vrot.lane.b32.xlu0 %v4759_v33, %s4365_s16  ;;  %1468 = vrot.lane.b32.xlu1 %v4785_v34, %s4362_s20  ;;  %s5517_s20 = sld [smem:[#allocation26_spill]] }
 0x1e2   : > { %1465 = vrot.lane.b32.xlu0 %v4785_v34, %s4360_s9  ;;  %1471 = vrot.lane.b32.xlu1 %v4785_v34, %s4359_s30  ;;  %s3676_s30 = sshll.u32 %s4339_s27, 8  ;;  %s3417_s27 = scalar_lea.sflag [#allocation4], %s4687_s4 }
 0x1e4   : > { %s5421_s14 = scalar_lea.hbm %s5517_s20, %s3676_s30 }
 0x1e6   : > { %1474 = vrot.lane.b32.xlu1 %v4785_v34, %s4361_s23 }
 0x228   : > { %v1170_v45 = vpop.permute.xlu1 %1169  ;;  %v1164_v46 = vpop.permute.xlu0 %1163 }
 0x229   : > { %v1200_v49 = vcombine.low %v1164_v46, %v1170_v45  ;;  %v1201_v50 = vcombine.high %v1164_v46, %v1170_v45 }
 0x22b   : > { %v1208_v56 = vrot.slane %v1200_v49, %v4794_v48  ;;  %v1215_v57 = vrot.slane %v1201_v50, %v4794_v48 }
 0x22c   : > { %v4796_v51 = vpop.permute.xlu1 %1172  ;;  %v1167_v52 = vpop.permute.xlu0 %1166 }
 0x22d   : > { %v1184_v53 = vcombine.low %v4740_v24, %v1167_v52  ;;  %v1185_v54 = vcombine.high %v4740_v24, %v1167_v52 }
 0x22f   : > { %v1192_v58 = vrot.slane %v1184_v53, %v4794_v48  ;;  %v1199_v59 = vrot.slane %v1185_v54, %v4794_v48 }
 0x230   : > { %v4806_v60 = vpop.permute.xlu1 %1178  ;;  %v4808_v61 = vpop.permute.xlu0 %1175 }
 0x231   : > { %v1248_v62 = vcombine.low %v1192_v58, %v1208_v56  ;;  %v1249_v63 = vcombine.high %v1192_v58, %v1208_v56  ;;  %v1264_v1 = vcombine.low %v1199_v59, %v1215_v57  ;;  %v1265_v2 = vcombine.high %v1199_v59, %v1215_v57 }
 0x232   : > { %v1216_v29 = vcombine.low %v4796_v51, %v4806_v60  ;;  %v1217_v40 = vcombine.high %v4796_v51, %v4806_v60 }
 0x233   : > { %v1256_v3 = vrot.slane %v1248_v62, %v4800_v55  ;;  %v1263_v4 = vrot.slane %v1249_v63, %v4800_v55  ;;  %v1272_v5 = vrot.slane %v1264_v1, %v4800_v55  ;;  %v1279_v6 = vrot.slane %v1265_v2, %v4800_v55 }
 0x234   : > { %v1182_v7 = vpop.permute.xlu0 %1181  ;;  %v569_v8 = vpop.permute.xlu1 %568  ;;  %v1224_v63 = vrot.slane %v1216_v29, %v4794_v48 }
 0x235   : > { %v3620_v9 = vcombine.low %v1256_v3, %v1263_v4  ;;  %v3622_v10 = vcombine.high %v1256_v3, %v1263_v4  ;;  %v3624_v11 = vcombine.low %v1272_v5, %v1279_v6  ;;  %v3626_v12 = vcombine.high %v1272_v5, %v1279_v6 }
 0x236   : > { %v1232_v26 = vcombine.low %v4808_v61, %v1182_v7  ;;  %v1233_v41 = vcombine.high %v4808_v61, %v1182_v7 }
 0x237   : > { %v4815_v15 = vrot.slane %v3620_v9, %v4794_v48  ;;  %v4818_v16 = vrot.slane %v3622_v10, %v4794_v48  ;;  %v4821_v17 = vrot.slane %v3624_v11, %v4794_v48  ;;  %v4824_v18 = vrot.slane %v3626_v12, %v4794_v48 }
 0x238   : > { %v575_v13 = vpop.permute.xlu1 %574  ;;  %v571_v14 = vpop.permute.xlu0 %570  ;;  %v1247_v1 = vrot.slane %v1233_v41, %v4794_v48 }
 0x239   : > { %v610_v19 = vcombine.low %v4753_v32, %v575_v13  ;;  %v1384_v24 = vcombine.low %v4815_v15, %v4818_v16  ;;  %v1416_v25 = vcombine.low %v4821_v17, %v4824_v18  ;;  %v611_v27 = vcombine.high %v4753_v32, %v575_v13 }
 0x23b   : > { %v618_v37 = vrot.slane %v610_v19, %v4794_v48  ;;  %v1392_v39 = vrot.slane %v1384_v24, %v4800_v55  ;;  %v1424_v32 = vrot.slane %v1416_v25, %v4800_v55  ;;  %v625_v44 = vrot.slane %v611_v27, %v4794_v48 }
 0x23c   : > { %v581_v20 = vpop.permute.xlu1 %580  ;;  %v577_v21 = vpop.permute.xlu0 %576 }
 0x23d   : > { %v626_v22 = vcombine.low %v569_v8, %v581_v20  ;;  %v627_v23 = vcombine.high %v569_v8, %v581_v20  ;;  %v746_v30 = vcombine.low %v4759_v33, %v577_v21  ;;  %v747_v31 = vcombine.high %v4759_v33, %v577_v21 }
 0x23e   : > { %v1240_v33 = vrot.slane %v1232_v26, %v4794_v48  ;;  %v1448_v57 = vcombine.low %v1392_v39, %v1424_v32  ;;  %v1449_v58 = vcombine.high %v1392_v39, %v1424_v32 }
 0x23f   : > { %v634_v28 = vrot.slane %v626_v22, %v4794_v48  ;;  %v641_v38 = vrot.slane %v627_v23, %v4794_v48  ;;  %v754_v47 = vrot.slane %v746_v30, %v4794_v48  ;;  %v761_v49 = vrot.slane %v747_v31, %v4794_v48 }
 0x240   : > { %v4838_v35 = vpop.permute.xlu1 %586  ;;  %v583_v36 = vpop.permute.xlu0 %582  ;;  %v1456_v12 = vpack.c.bf16 %v1448_v57, %v1448_v57  ;;  %v1457_v13 = vpack.c.bf16 %v1449_v58, %v1449_v58  ;;  %v1280_v19 = vcombine.low %v1224_v63, %v1240_v33  ;;  %v1281_v20 = vcombine.high %v1224_v63, %v1240_v33 }
 0x241   : > { %v762_v42 = vcombine.low %v571_v14, %v583_v36  ;;  %v763_v43 = vcombine.high %v571_v14, %v583_v36  ;;  %v674_v45 = vcombine.low %v618_v37, %v634_v28  ;;  %v675_v46 = vcombine.high %v618_v37, %v634_v28 }
 0x242   : > { %v690_v54 = vcombine.low %v625_v44, %v641_v38  ;;  %v691_v56 = vcombine.high %v625_v44, %v641_v38  ;;  %v1231_v14 = vrot.slane %v1217_v40, %v4794_v48  ;;  %v1771_v36 = vsel %vm1766_vm2, %v1456_v12, 0 }
 0x243   : > { %v770_v50 = vrot.slane %v762_v42, %v4794_v48  ;;  %v777_v52 = vrot.slane %v763_v43, %v4794_v48  ;;  %v682_v2 = vrot.slane %v674_v45, %v4800_v55  ;;  %v689_v3 = vrot.slane %v675_v46, %v4800_v55  ;;  %3746 = vmatpush3.bf16.xpose.msra.mxu1 %v1771_v36 }
 0x244   : > { %v4853_v53 = vpop.permute.xlu1 %592  ;;  %v4855_v51 = vpop.permute.xlu0 %588  ;;  %v698_v10 = vrot.slane %v690_v54, %v4800_v55  ;;  %v705_v11 = vrot.slane %v691_v56, %v4800_v55  ;;  %v1296_v25 = vcombine.low %v1231_v14, %v1247_v1  ;;  %v1297_v26 = vcombine.high %v1231_v14, %v1247_v1  ;;  %3757 = vmatprep.subr.bf16.mxu1 %v4357_v0 }
 0x245   : > { %v810_v59 = vcombine.low %v754_v47, %v770_v50  ;;  %v811_v60 = vcombine.high %v754_v47, %v770_v50  ;;  %v826_v61 = vcombine.low %v761_v49, %v777_v52  ;;  %v827_v62 = vcombine.high %v761_v49, %v777_v52 }
 0x246   : > { %v3604_v27 = vcombine.low %v682_v2, %v689_v3  ;;  %v3606_v28 = vcombine.high %v682_v2, %v689_v3  ;;  %v3608_v30 = vcombine.low %v698_v10, %v705_v11  ;;  %v3610_v31 = vcombine.high %v698_v10, %v705_v11 }
 0x247   : > { %v818_v4 = vrot.slane %v810_v59, %v4800_v55  ;;  %v825_v5 = vrot.slane %v811_v60, %v4800_v55  ;;  %v834_v6 = vrot.slane %v826_v61, %v4800_v55  ;;  %v841_v7 = vrot.slane %v827_v62, %v4800_v55 }
 0x248   : > { %v4865_v8 = vpop.permute.xlu1 %598  ;;  %v595_v9 = vpop.permute.xlu0 %594  ;;  %v1818_v37 = vsel %vm1766_vm2, %v1457_v13, 0  ;;  %v1288_v38 = vrot.slane %v1280_v19, %v4800_v55  ;;  %v1295_v39 = vrot.slane %v1281_v20, %v4800_v55  ;;  %v1304_v33 = vrot.slane %v1296_v25, %v4800_v55 }
 0x249   : > { %v3612_v21 = vcombine.low %v818_v4, %v825_v5  ;;  %v3614_v22 = vcombine.high %v818_v4, %v825_v5  ;;  %v3616_v23 = vcombine.low %v834_v6, %v841_v7  ;;  %v3618_v24 = vcombine.high %v834_v6, %v841_v7  ;;  %3752 = vmatpush3.bf16.xpose.msra.mxu0 %v1818_v37 }
 0x24a   : > { %v1311_v44 = vrot.slane %v1297_v26, %v4800_v55  ;;  %v890_v45 = vrot.slane %v3604_v27, %v4794_v48  ;;  %v906_v46 = vrot.slane %v3606_v28, %v4794_v48  ;;  %v922_v49 = vrot.slane %v3608_v30, %v4794_v48  ;;  %3763 = vmatprep.subr.bf16.mxu0 %v4357_v0 }
 0x24b   : > { %v4875_v40 = vrot.slane %v3612_v21, %v4794_v48  ;;  %v4878_v41 = vrot.slane %v3614_v22, %v4794_v48  ;;  %v4881_v42 = vrot.slane %v3616_v23, %v4794_v48  ;;  %v4884_v43 = vrot.slane %v3618_v24, %v4794_v48 }
 0x24c   : > { %v601_v29 = vpop.permute.xlu0 %600  ;;  %v605_v32 = vpop.permute.xlu1 %604  ;;  %v938_v50 = vrot.slane %v3610_v31, %v4794_v48  ;;  %v642_v62 = vcombine.low %v4838_v35, %v4865_v8  ;;  %v3621_v63 = vcombine.low %v1288_v38, %v1295_v39  ;;  %v3623_v1 = vcombine.high %v1288_v38, %v1295_v39 }
 0x24d   : > { %v658_v52 = vcombine.low %v4853_v53, %v605_v32  ;;  %v659_v54 = vcombine.high %v4853_v53, %v605_v32  ;;  %v778_v56 = vcombine.low %v4855_v51, %v601_v29  ;;  %v779_v57 = vcombine.high %v4855_v51, %v601_v29 }
 0x24e   : > { %v1082_v60 = vcombine.low %v4875_v40, %v4878_v41  ;;  %v1114_v61 = vcombine.low %v4881_v42, %v4884_v43  ;;  %v643_v53 = vcombine.high %v4838_v35, %v4865_v8  ;;  %v3625_v3 = vcombine.low %v1304_v33, %v1311_v44 }
 0x24f   : > { %v946_v4 = vcombine.low %v890_v45, %v906_v46  ;;  %v978_v5 = vcombine.low %v922_v49, %v938_v50  ;;  %v666_v6 = vrot.slane %v658_v52, %v4794_v48  ;;  %v3627_v7 = vcombine.high %v1304_v33, %v1311_v44 }
 0x250   : > { %v607_v47 = vpop.permute.xlu0 %606  ;;  %v786_v10 = vrot.slane %v778_v56, %v4794_v48  ;;  %v793_v11 = vrot.slane %v779_v57, %v4794_v48  ;;  %v1090_v35 = vrot.slane %v1082_v60, %v4800_v55  ;;  %v1122_v8 = vrot.slane %v1114_v61, %v4800_v55 }
 0x251   : > { %v794_v58 = vcombine.low %v595_v9, %v607_v47  ;;  %v795_v59 = vcombine.high %v595_v9, %v607_v47  ;;  %v673_v9 = vrot.slane %v659_v54, %v4794_v48  ;;  %v650_v12 = vrot.slane %v642_v62, %v4794_v48 }
 0x252   : > { %v657_v13 = vrot.slane %v643_v53, %v4794_v48  ;;  %v954_v22 = vrot.slane %v946_v4, %v4800_v55  ;;  %v986_v23 = vrot.slane %v978_v5, %v4800_v55  ;;  %v947_v26 = vcombine.high %v890_v45, %v906_v46 }
 0x253   : > { %v802_v2 = vrot.slane %v794_v58, %v4794_v48  ;;  %v809_v51 = vrot.slane %v795_v59, %v4794_v48  ;;  %v706_v24 = vcombine.low %v650_v12, %v666_v6  ;;  %v707_v25 = vcombine.high %v650_v12, %v666_v6 }
 0x254   : > { %v979_v27 = vcombine.high %v922_v49, %v938_v50  ;;  %v722_v28 = vcombine.low %v657_v13, %v673_v9  ;;  %v723_v29 = vcombine.high %v657_v13, %v673_v9  ;;  %v4919_v30 = vrot.slane %v3621_v63, %v4794_v48 }
 0x255   : > { %v842_v14 = vcombine.low %v786_v10, %v802_v2  ;;  %v843_v19 = vcombine.high %v786_v10, %v802_v2  ;;  %v858_v20 = vcombine.low %v793_v11, %v809_v51  ;;  %v859_v21 = vcombine.high %v793_v11, %v809_v51 }
 0x256   : > { %v4922_v31 = vrot.slane %v3623_v1, %v4794_v48  ;;  %v4925_v36 = vrot.slane %v3625_v3, %v4794_v48  ;;  %v1146_v37 = vcombine.low %v1090_v35, %v1122_v8  ;;  %v4932_v44 = vrot.slane %v3627_v7, %v4794_v48 }
 0x257   : > { %v850_v38 = vrot.slane %v842_v14, %v4800_v55  ;;  %v857_v39 = vrot.slane %v843_v19, %v4800_v55  ;;  %v866_v32 = vrot.slane %v858_v20, %v4800_v55  ;;  %v873_v33 = vrot.slane %v859_v21, %v4800_v55 }
 0x258   : > { %v714_v45 = vrot.slane %v706_v24, %v4800_v55  ;;  %v721_v46 = vrot.slane %v707_v25, %v4800_v55  ;;  %v1010_v47 = vcombine.low %v954_v22, %v986_v23  ;;  %v4937_v49 = vrot.slane %v947_v26, %v4800_v55 }
 0x259   : > { %v4940_v50 = vrot.slane %v979_v27, %v4800_v55  ;;  %v730_v52 = vrot.slane %v722_v28, %v4800_v55  ;;  %v737_v54 = vrot.slane %v723_v29, %v4800_v55  ;;  %v1011_v57 = vcombine.high %v954_v22, %v986_v23 }
 0x25a   : > { %v1154_v56 = vpack.c.bf16 %v1146_v37, %v1010_v47  ;;  %v1147_v58 = vcombine.high %v1090_v35, %v1122_v8  ;;  %v1385_v59 = vcombine.high %v4815_v15, %v4818_v16  ;;  %v3613_v60 = vcombine.low %v850_v38, %v857_v39 }
 0x25b   : > { %v3615_v61 = vcombine.high %v850_v38, %v857_v39  ;;  %v3617_v62 = vcombine.low %v866_v32, %v873_v33  ;;  %v3619_v53 = vcombine.high %v866_v32, %v873_v33  ;;  %v3605_v63 = vcombine.low %v714_v45, %v721_v46 }
 0x25c   : > { %3748 = vmatmul.mubr.msk.bf16.vlgmr.msra.gmra.mrb[4].mxu1 %vm1766_vm2, %v1154_v56  ;;  %v1155_v1 = vpack.c.bf16 %v1147_v58, %v1011_v57  ;;  %v1399_v2 = vrot.slane %v1385_v59, %v4800_v55  ;;  %v1417_v51 = vcombine.high %v4821_v17, %v4824_v18  ;;  %v3607_v3 = vcombine.high %v714_v45, %v721_v46 }
 0x25d   : > { %v3609_v4 = vcombine.low %v730_v52, %v737_v54  ;;  %v3611_v5 = vcombine.high %v730_v52, %v737_v54  ;;  %3759 = vmatprep.mubr.msk.bf16.mxu1 %vm4358_vm0, %v4357_v0  ;;  %v1400_v15 = vcombine.low %v4919_v30, %v4922_v31  ;;  %v1083_v16 = vcombine.high %v4875_v40, %v4878_v41 }
 0x25e   : > { %v1115_v6 = vcombine.high %v4881_v42, %v4884_v43  ;;  %3754 = vmatmul.mubr.msk.bf16.vlgmr.msra.gmra.mrb[8].mxu0 %vm1766_vm2, %v1155_v1  ;;  %v1431_v7 = vrot.slane %v1417_v51, %v4800_v55  ;;  %v1432_v17 = vcombine.low %v4925_v36, %v4932_v44  ;;  %v4963_v18 = vrot.slane %v3613_v60, %v4794_v48 }
 0x25f   : > { %v4966_v9 = vrot.slane %v3615_v61, %v4794_v48  ;;  %v4969_v10 = vrot.slane %v3617_v62, %v4794_v48  ;;  %v4972_v40 = vrot.slane %v3619_v53, %v4794_v48  ;;  %3765 = vmatprep.mubr.msk.bf16.mxu0 %vm4358_vm0, %v4357_v0  ;;  %v1408_v43 = vrot.slane %v1400_v15, %v4800_v55 }
 0x260   : > { %v1450_v41 = vcombine.low %v1399_v2, %v1431_v7  ;;  %v1451_v42 = vcombine.high %v1399_v2, %v1431_v7  ;;  %v1440_v11 = vrot.slane %v1432_v17, %v4800_v55  ;;  %v4979_v35 = vrot.slane %v3605_v63, %v4794_v48 }
 0x261   : > { %v4982_v8 = vrot.slane %v3607_v3, %v4794_v48  ;;  %v4985_v12 = vrot.slane %v3609_v4, %v4794_v48  ;;  %v4988_v13 = vrot.slane %v3611_v5, %v4794_v48  ;;  %v1097_v14 = vrot.slane %v1083_v16, %v4800_v55  ;;  %v1469_v5 = vpop.permute.xlu1 %1468 }
 0x262   : > { %v1129_v19 = vrot.slane %v1115_v6, %v4800_v55  ;;  %v1458_v20 = vpack.c.bf16 %v1450_v41, %v1450_v41  ;;  %v1459_v21 = vpack.c.bf16 %v1451_v42, %v1451_v42  ;;  %v1098_v22 = vcombine.low %v4963_v18, %v4966_v9 }
 0x263   : > { %v1130_v23 = vcombine.low %v4969_v10, %v4972_v40  ;;  %v1401_v24 = vcombine.high %v4919_v30, %v4922_v31  ;;  %v1433_v25 = vcombine.high %v4925_v36, %v4932_v44  ;;  %v1452_v28 = vcombine.low %v1408_v43, %v1440_v11 }
 0x264   : > { %v1865_v26 = vsel %vm1766_vm2, %v1458_v20, 0  ;;  %v1912_v27 = vsel %vm1766_vm2, %v1459_v21, 0  ;;  %v1453_v29 = vcombine.high %v1408_v43, %v1440_v11  ;;  %v962_v37 = vcombine.low %v4979_v35, %v4982_v8 }
 0x265   : > { %v994_v38 = vcombine.low %v4985_v12, %v4988_v13  ;;  %3758 = vmatpush3.bf16.xpose.msra.mxu1 %v1865_v26  ;;  %3764 = vmatpush3.bf16.xpose.msra.mxu0 %v1912_v27  ;;  %v1148_v30 = vcombine.low %v1097_v14, %v1129_v19  ;;  %v1149_v31 = vcombine.high %v1097_v14, %v1129_v19  ;;  %v1472_v43 = vpop.permute.xlu1 %1471 }
 0x266   : > { %3769 = vmatprep.subr.bf16.mxu1 %v4357_v0  ;;  %3775 = vmatprep.subr.bf16.mxu0 %v4357_v0  ;;  %v1106_v36 = vrot.slane %v1098_v22, %v4800_v55  ;;  %v1138_v39 = vrot.slane %v1130_v23, %v4800_v55  ;;  %v1415_v32 = vrot.slane %v1401_v24, %v4800_v55 }
 0x267   : > { %v1447_v33 = vrot.slane %v1433_v25, %v4800_v55  ;;  %v1012_v44 = vcombine.low %v4937_v49, %v4940_v50  ;;  %v1013_v45 = vcombine.high %v4937_v49, %v4940_v50  ;;  %v1460_v46 = vpack.c.bf16 %v1452_v28, %v1452_v28 }
 0x268   : > { %v1461_v47 = vpack.c.bf16 %v1453_v29, %v1453_v29  ;;  %v970_v52 = vrot.slane %v962_v37, %v4800_v55  ;;  %v1002_v54 = vrot.slane %v994_v38, %v4800_v55  ;;  %v1150_v58 = vcombine.low %v1106_v36, %v1138_v39 }
 0x269   : > { %v1156_v56 = vpack.c.bf16 %v1148_v30, %v1012_v44  ;;  %v1157_v57 = vpack.c.bf16 %v1149_v31, %v1013_v45  ;;  %v1454_v59 = vcombine.low %v1415_v32, %v1447_v33  ;;  %v1959_v60 = vsel %vm1766_vm2, %v1460_v46, 0 }
 0x26a   : > { %v2006_v61 = vsel %vm1766_vm2, %v1461_v47, 0  ;;  %v1151_v62 = vcombine.high %v1106_v36, %v1138_v39  ;;  %v1455_v49 = vcombine.high %v1415_v32, %v1447_v33  ;;  %v1099_v50 = vcombine.high %v4963_v18, %v4966_v9  ;;  %v1466_v9 = vpop.permute.xlu0 %1465 }
 0x26b   : > { %v1131_v53 = vcombine.high %v4969_v10, %v4972_v40  ;;  %v1014_v63 = vcombine.low %v970_v52, %v1002_v54  ;;  %v963_v1 = vcombine.high %v4979_v35, %v4982_v8  ;;  %v1015_v2 = vcombine.high %v970_v52, %v1002_v54 }
 0x26c   : > { %3760 = vmatmul.mubr.msk.bf16.vlgmr.msra.gmra.mrb[8].mxu1 %vm1766_vm2, %v1156_v56  ;;  %3766 = vmatmul.mubr.msk.bf16.vlgmr.msra.gmra.mrb[12].mxu0 %vm1766_vm2, %v1157_v57  ;;  %v995_v51 = vcombine.high %v4985_v12, %v4988_v13  ;;  %v1462_v4 = vpack.c.bf16 %v1454_v59, %v1454_v59  ;;  %v1463_v16 = vpack.c.bf16 %v1455_v49, %v1455_v49 }
 0x26d   : > { %3770 = vmatpush3.bf16.xpose.msra.mxu1 %v1959_v60  ;;  %3776 = vmatpush3.bf16.xpose.msra.mxu0 %v2006_v61  ;;  %v1158_v3 = vpack.c.bf16 %v1150_v58, %v1014_v63  ;;  %v1159_v15 = vpack.c.bf16 %v1151_v62, %v1015_v2  ;;  %v1486_v6 = vcombine.low %v4785_v34, %v1469_v5 }
 0x26e   : > { %3771 = vmatprep.mubr.msk.bf16.mxu1 %vm4358_vm0, %v4357_v0  ;;  %3777 = vmatprep.mubr.msk.bf16.mxu0 %vm4358_vm0, %v4357_v0  ;;  %v1487_v7 = vcombine.high %v4785_v34, %v1469_v5  ;;  %v1113_v17 = vrot.slane %v1099_v50, %v4800_v55  ;;  %v1145_v18 = vrot.slane %v1131_v53, %v4800_v55  ;;  %v2053_v41 = vsel %vm1766_vm2, %v1462_v4, 0 }
 0x26f   : > { %3781 = vmatprep.subr.bf16.mxu1 %v4357_v0  ;;  %3787 = vmatprep.subr.bf16.mxu0 %v4357_v0  ;;  %v977_v10 = vrot.slane %v963_v1, %v4800_v55  ;;  %v1009_v40 = vrot.slane %v995_v51, %v4800_v55  ;;  %v1494_v42 = vrot.slane %v1486_v6, %v4794_v48  ;;  %v2100_v11 = vsel %vm1766_vm2, %v1463_v16, 0 }
 0x270   : > { %v1501_v35 = vrot.slane %v1487_v7, %v4794_v48  ;;  %v1502_v8 = vcombine.low %v1466_v9, %v1472_v43  ;;  %v1503_v12 = vcombine.high %v1466_v9, %v1472_v43  ;;  %v1152_v13 = vcombine.low %v1113_v17, %v1145_v18 }
 0x271   : > { %v1153_v14 = vcombine.high %v1113_v17, %v1145_v18  ;;  %v1016_v21 = vcombine.low %v977_v10, %v1009_v40  ;;  %v1017_v22 = vcombine.high %v977_v10, %v1009_v40 }
 0x272   : > { %v1510_v19 = vrot.slane %v1502_v8, %v4794_v48  ;;  %v1517_v20 = vrot.slane %v1503_v12, %v4794_v48 }
 0x273   : > { %v1160_v27 = vpack.c.bf16 %v1152_v13, %v1016_v21  ;;  %v1161_v28 = vpack.c.bf16 %v1153_v14, %v1017_v22 }
 0x274   : > { %3772 = vmatmul.mubr.msk.bf16.vlgmr.msra.gmra.mrb[12].mxu1 %vm1766_vm2, %v1158_v3  ;;  %3778 = vmatmul.mubr.msk.bf16.vlgmr.msra.gmra.mrb[16].mxu0 %vm1766_vm2, %v1159_v15  ;;  %v1550_v23 = vcombine.low %v1494_v42, %v1510_v19  ;;  %v1551_v24 = vcombine.high %v1494_v42, %v1510_v19  ;;  %v1566_v25 = vcombine.low %v1501_v35, %v1517_v20 }
 0x275   : > { %3782 = vmatpush3.bf16.xpose.msra.mxu1 %v2053_v41  ;;  %3788 = vmatpush3.bf16.xpose.msra.mxu0 %v2100_v11  ;;  %v1567_v26 = vcombine.high %v1501_v35, %v1517_v20 }
 0x276   : > { %3783 = vmatprep.mubr.msk.bf16.mxu1 %vm4358_vm0, %v4357_v0  ;;  %3789 = vmatprep.mubr.msk.bf16.mxu0 %vm4358_vm0, %v4357_v0  ;;  %v1558_v29 = vrot.slane %v1550_v23, %v4800_v55  ;;  %v1565_v37 = vrot.slane %v1551_v24, %v4800_v55  ;;  %v1574_v38 = vrot.slane %v1566_v25, %v4800_v55 }
 0x277   : > { %3793 = vmatprep.subr.bf16.mxu1 %v4357_v0  ;;  %3799 = vmatprep.subr.bf16.mxu0 %v4357_v0  ;;  %v1581_v30 = vrot.slane %v1567_v26, %v4800_v55 }
 0x278   : > { %v3628_v31 = vcombine.low %v1558_v29, %v1565_v37  ;;  %v3630_v36 = vcombine.high %v1558_v29, %v1565_v37 }
 0x279   : > { %v3632_v39 = vcombine.low %v1574_v38, %v1581_v30  ;;  %v3634_v32 = vcombine.high %v1574_v38, %v1581_v30 }
 0x27a   : > { %v1630_v33 = vrot.slane %v3628_v31, %v4794_v48  ;;  %v1646_v44 = vrot.slane %v3630_v36, %v4794_v48 }
 0x27b   : > { %v1662_v45 = vrot.slane %v3632_v39, %v4794_v48  ;;  %v1678_v46 = vrot.slane %v3634_v32, %v4794_v48 }
 0x27c   : > { %3784 = vmatmul.mubr.msk.bf16.vlgmr.msra.gmra.mrb[16].mxu1 %vm1766_vm2, %v1160_v27  ;;  %3790 = vmatmul.mubr.msk.bf16.vlgmr.msra.gmra.mrb[20].mxu0 %vm1766_vm2, %v1161_v28  ;;  %v1686_v47 = vcombine.low %v1630_v33, %v1646_v44  ;;  %v1687_v49 = vcombine.high %v1630_v33, %v1646_v44 }
 0x27d   : > { %3795 = vmatprep.mubr.msk.bf16.mxu1 %vm4358_vm0, %v4357_v0  ;;  %3801 = vmatprep.mubr.msk.bf16.mxu0 %vm4358_vm0, %v4357_v0  ;;  %v1718_v52 = vcombine.low %v1662_v45, %v1678_v46  ;;  %v1719_v50 = vcombine.high %v1662_v45, %v1678_v46 }
 0x27e   : > { %v1694_v54 = vrot.slane %v1686_v47, %v4800_v55  ;;  %v1701_v53 = vrot.slane %v1687_v49, %v4800_v55 }
 0x27f   : > { %v1726_v56 = vrot.slane %v1718_v52, %v4800_v55  ;;  %v1733_v63 = vrot.slane %v1719_v50, %v4800_v55 }
 0x281   : > { %v1750_v57 = vcombine.low %v1694_v54, %v1726_v56  ;;  %v1751_v58 = vcombine.high %v1694_v54, %v1726_v56  ;;  %v5078_v1 = vcombine.low %v1701_v53, %v1733_v63  ;;  %v5080_v2 = vcombine.high %v1701_v53, %v1733_v63 }
 0x283   : > { %v1758_v59 = vpack.c.bf16 %v1750_v57, %v1750_v57  ;;  %v1759_v60 = vpack.c.bf16 %v1751_v58, %v1751_v58  ;;  %v5150_v57 = vpop.permute.xlu1 %1474 }
 0x285   : > { %v2365_v61 = vsel %vm2363_vm3, %v1758_v59, 0  ;;  %v2412_v62 = vsel %vm2363_vm3, %v1759_v60, 0 }
 0x286   : > { %3794 = vmatpush3.bf16.msra.mxu1 %v2365_v61  ;;  %3800 = vmatpush3.bf16.msra.mxu0 %v2412_v62 }
 0x287   : > { %3805 = vmatprep.subr.bf16.mxu1 %v4357_v0  ;;  %3811 = vmatprep.subr.bf16.mxu0 %v4357_v0 }
 0x32f   : > { %v5082_v51 = vpop.f32.mrb[4].mxu1 }
 0x330   : > { %v3749_v3 = vpop.f32.mrb[5].mxu1  ;;  %v2144_v4 = vsel %vm2143_vm4, %v5082_v51, -inf }
 0x331   : > { %v5086_v5 = vpop.f32.mrb[8].mxu0  ;;  %v5088_v15 = vpop.f32.mrb[6].mxu1  ;;  %2145 = vmax.xlane.f32.xlu1 %v2144_v4 }
 0x332   : > { %v3755_v16 = vpop.f32.mrb[9].mxu0  ;;  %v2150_v6 = vsel %vm2143_vm4, %v5086_v5, -inf  ;;  %v3750_v7 = vpop.f32.mrb[7].mxu1  ;;  %v2147_v10 = vsel %vm2143_vm4, %v5088_v15, -inf }
 0x333   : > { %2151 = vmax.xlane.f32.xlu0 %v2150_v6  ;;  %v5092_v17 = vpop.f32.mrb[10].mxu0 }
 0x334   : > { %v3756_v18 = vpop.f32.mrb[11].mxu0  ;;  %v2153_v9 = vsel %vm2143_vm4, %v5092_v17, -inf }
 0x335   : > { %2154 = vmax.xlane.f32.xlu1 %v2153_v9 }
 0x337   : > { %2148 = vmax.xlane.f32.xlu0 %v2147_v10 }
 0x33f   : > { %v5098_v40 = vpop.f32.mrb[8].mxu1  ;;  %v5100_v41 = vpop.f32.mrb[12].mxu0 }
 0x340   : > { %v3761_v42 = vpop.f32.mrb[9].mxu1  ;;  %v3767_v43 = vpop.f32.mrb[13].mxu0  ;;  %v2156_v11 = vsel %vm2143_vm4, %v5098_v40, -inf  ;;  %v2162_v19 = vsel %vm2143_vm4, %v5100_v41, -inf }
 0x341   : > { %v5104_v35 = vpop.f32.mrb[10].mxu1  ;;  %2157 = vmax.xlane.f32.xlu0 %v2156_v11  ;;  %v5106_v8 = vpop.f32.mrb[14].mxu0 }
 0x342   : > { %v3762_v12 = vpop.f32.mrb[11].mxu1  ;;  %v3768_v13 = vpop.f32.mrb[15].mxu0  ;;  %v2159_v14 = vsel %vm2143_vm4, %v5104_v35, -inf  ;;  %v2165_v20 = vsel %vm2143_vm4, %v5106_v8, -inf }
 0x343   : > { %2160 = vmax.xlane.f32.xlu1 %v2159_v14 }
 0x345   : > { %2163 = vmax.xlane.f32.xlu0 %v2162_v19 }
 0x347   : > { %v5114_v21 = vpop.f32.mrb[12].mxu1  ;;  %2166 = vmax.xlane.f32.xlu1 %v2165_v20  ;;  %v5116_v22 = vpop.f32.mrb[16].mxu0 }
 0x348   : > { %v3773_v23 = vpop.f32.mrb[13].mxu1  ;;  %v3779_v24 = vpop.f32.mrb[17].mxu0  ;;  %v2168_v25 = vsel %vm2143_vm4, %v5114_v21, -inf  ;;  %v2174_v38 = vsel %vm2143_vm4, %v5116_v22, -inf }
 0x349   : > { %v5120_v26 = vpop.f32.mrb[14].mxu1  ;;  %2169 = vmax.xlane.f32.xlu0 %v2168_v25  ;;  %v5122_v27 = vpop.f32.mrb[18].mxu0 }
 0x34a   : > { %v3774_v28 = vpop.f32.mrb[15].mxu1  ;;  %v3780_v29 = vpop.f32.mrb[19].mxu0  ;;  %v2171_v37 = vsel %vm2143_vm4, %v5120_v26, -inf  ;;  %v2177_v30 = vsel %vm2143_vm4, %v5122_v27, -inf }
 0x34b   : > { %2172 = vmax.xlane.f32.xlu1 %v2171_v37 }
 0x34d   : > { %2175 = vmax.xlane.f32.xlu0 %v2174_v38 }
 0x34f   : > { %v5130_v31 = vpop.f32.mrb[16].mxu1  ;;  %2178 = vmax.xlane.f32.xlu1 %v2177_v30  ;;  %v5132_v36 = vpop.f32.mrb[20].mxu0 }
 0x350   : > { %v3785_v39 = vpop.f32.mrb[17].mxu1  ;;  %v3791_v32 = vpop.f32.mrb[21].mxu0  ;;  %v2180_v33 = vsel %vm2143_vm4, %v5130_v31, -inf  ;;  %v2186_v54 = vsel %vm2143_vm4, %v5132_v36, -inf }
 0x351   : > { %v5136_v44 = vpop.f32.mrb[18].mxu1  ;;  %2181 = vmax.xlane.f32.xlu0 %v2180_v33  ;;  %v5138_v45 = vpop.f32.mrb[22].mxu0 }
 0x352   : > { %v3786_v46 = vpop.f32.mrb[19].mxu1  ;;  %v3792_v47 = vpop.f32.mrb[23].mxu0  ;;  %v2183_v52 = vsel %vm2143_vm4, %v5136_v44, -inf  ;;  %v2189_v56 = vsel %vm2143_vm4, %v5138_v45, -inf }
 0x353   : > { %2184 = vmax.xlane.f32.xlu1 %v2183_v52 }
 0x355   : > { %2187 = vmax.xlane.f32.xlu0 %v2186_v54 }
 0x357   : > { %2190 = vmax.xlane.f32.xlu1 %v2189_v56 }
 0x368   : > { %1480 = vrot.lane.b32.xlu1 %v4785_v34, %s4363_s22  ;;  %s4249_s22 = scalar_lea.vmem %s5415_s7, 256 }
 0x369   : > { %p4250_p13 = scmp.ne.s32.totalorder %s5415_s7, %s4249_s22 }
 0x36b   : > { %1477 = vrot.lane.b32.xlu0 %v4785_v34, %s4364_s13  ;;  %p4251_p1 = pnand %p4250_p13, %p5518_p4  ;;  %s4375_s13 = smov [#allocation13]  }
 0x36d   : > { %p4252_p8 = pneg %p4251_p1 }
 0x3be   : > { %v2146_v58 = vpop.xlane.xlu1 %2145 }
 0x3bf   : > { %v2192_v59 = vsub.f32 %v5082_v51, %v2146_v58 }
 0x3c0   : > { %v2152_v60 = vpop.xlane.xlu0 %2151 }
 0x3c1   : > { %v2208_v61 = vmul.f32 1.442695, %v2192_v59  ;;  %v2194_v62 = vsub.f32 %v5086_v5, %v2152_v60 }
 0x3c2   : > { %v2155_v49 = vpop.xlane.xlu1 %2154 }
 0x3c3   : > { %4013 = vpow2.f32 %v2208_v61  ;;  %v2212_v50 = vmul.f32 1.442695, %v2194_v62  ;;  %v2195_v53 = vsub.f32 %v5092_v17, %v2155_v49 }
 0x3c4   : > { %v2149_v63 = vpop.xlane.xlu0 %2148 }
 0x3c5   : > { %4015 = vpow2.f32 %v2212_v50  ;;  %v2193_v3 = vsub.f32 %v5088_v15, %v2149_v63  ;;  %v2214_v16 = vmul.f32 1.442695, %v2195_v53 }
 0x3c7   : > { %v2210_v4 = vmul.f32 1.442695, %v2193_v3 }
 0x3c9   : > { %4017 = vpow2.f32 %v2210_v4 }
 0x3ca   : > { %4019 = vpow2.f32 %v2214_v16 }
 0x3cd   : > { %v5156_v6 = vpop.eup %4013 }
 0x3ce   : > { %v2158_v51 = vpop.xlane.xlu0 %2157  ;;  %v2240_v7 = vsel %vm2143_vm4, %v5156_v6, 0.0 }
 0x3cf   : > { %v5160_v5 = vpop.eup %4015  ;;  %v2196_v18 = vsub.f32 %v5098_v40, %v2158_v51  ;;  %2241 = vadd.xlane.f32.xlu0 %v2240_v7 }
 0x3d0   : > { %v2161_v17 = vpop.xlane.xlu1 %2160  ;;  %v2246_v42 = vsel %vm2143_vm4, %v5160_v5, 0.0 }
 0x3d1   : > { %v2216_v9 = vmul.f32 1.442695, %v2196_v18  ;;  %v2197_v10 = vsub.f32 %v5104_v35, %v2161_v17 }
 0x3d2   : > { %v2164_v15 = vpop.xlane.xlu0 %2163 }
 0x3d3   : > { %v5166_v43 = vpop.eup %4017  ;;  %4021 = vpow2.f32 %v2216_v9  ;;  %v2218_v11 = vmul.f32 1.442695, %v2197_v10  ;;  %v2198_v12 = vsub.f32 %v5100_v41, %v2164_v15  ;;  %2247 = vadd.xlane.f32.xlu0 %v2246_v42 }
 0x3d4   : > { %v2167_v13 = vpop.xlane.xlu1 %2166  ;;  %v2243_v40 = vsel %vm2143_vm4, %v5166_v43, 0.0  ;;  %v5171_v14 = vpop.eup %4019 }
 0x3d5   : > { %4023 = vpow2.f32 %v2218_v11  ;;  %v2220_v19 = vmul.f32 1.442695, %v2198_v12  ;;  %v2199_v35 = vsub.f32 %v5106_v8, %v2167_v13  ;;  %2244 = vadd.xlane.f32.xlu1 %v2243_v40  ;;  %v2249_v41 = vsel %vm2143_vm4, %v5171_v14, 0.0 }
 0x3d6   : > { %v2170_v20 = vpop.xlane.xlu0 %2169 }
 0x3d7   : > { %4025 = vpow2.f32 %v2220_v19  ;;  %v2222_v23 = vmul.f32 1.442695, %v2199_v35  ;;  %v2200_v24 = vsub.f32 %v5114_v21, %v2170_v20 }
 0x3d8   : > { %v2173_v25 = vpop.xlane.xlu1 %2172 }
 0x3d9   : > { %4027 = vpow2.f32 %v2222_v23  ;;  %v2224_v28 = vmul.f32 1.442695, %v2200_v24  ;;  %v2201_v29 = vsub.f32 %v5120_v26, %v2173_v25  ;;  %2250 = vadd.xlane.f32.xlu1 %v2249_v41 }
 0x3da   : > { %v2176_v37 = vpop.xlane.xlu0 %2175 }
 0x3db   : > { %4029 = vpow2.f32 %v2224_v28  ;;  %v2226_v38 = vmul.f32 1.442695, %v2201_v29  ;;  %v2202_v8 = vsub.f32 %v5116_v22, %v2176_v37 }
 0x3dc   : > { %v2179_v30 = vpop.xlane.xlu1 %2178 }
 0x3dd   : > { %v5179_v39 = vpop.eup %4021  ;;  %4031 = vpow2.f32 %v2226_v38  ;;  %v2228_v32 = vmul.f32 1.442695, %v2202_v8  ;;  %v2203_v21 = vsub.f32 %v5122_v27, %v2179_v30 }
 0x3de   : > { %v2182_v33 = vpop.xlane.xlu0 %2181  ;;  %v2252_v46 = vsel %vm2143_vm4, %v5179_v39, 0.0 }
 0x3df   : > { %v5184_v47 = vpop.eup %4023  ;;  %4033 = vpow2.f32 %v2228_v32  ;;  %v2230_v26 = vmul.f32 1.442695, %v2203_v21  ;;  %v2204_v52 = vsub.f32 %v5130_v31, %v2182_v33  ;;  %2253 = vadd.xlane.f32.xlu0 %v2252_v46  ;;  %v1760_v32 = vpack.c.bf16 %v5078_v1, %v5078_v1 }
 0x3e0   : > { %v2185_v54 = vpop.xlane.xlu1 %2184  ;;  %v2255_v22 = vsel %vm2143_vm4, %v5184_v47, 0.0 }
 0x3e1   : > { %v5189_v56 = vpop.eup %4025  ;;  %4035 = vpow2.f32 %v2230_v26  ;;  %v2232_v58 = vmul.f32 1.442695, %v2204_v52  ;;  %2256 = vadd.xlane.f32.xlu1 %v2255_v22  ;;  %v2205_v11 = vsub.f32 %v5136_v44, %v2185_v54  ;;  %v1761_v54 = vpack.c.bf16 %v5080_v2, %v5080_v2 }
 0x3e2   : > { %v2188_v27 = vpop.xlane.xlu0 %2187  ;;  %v2258_v59 = vsel %vm2143_vm4, %v5189_v56, 0.0 }
 0x3e3   : > { %v5193_v60 = vpop.eup %4027  ;;  %v2206_v61 = vsub.f32 %v5132_v36, %v2188_v27  ;;  %2259 = vadd.xlane.f32.xlu0 %v2258_v59  ;;  %4037 = vpow2.f32 %v2232_v58  ;;  %v2234_v12 = vmul.f32 1.442695, %v2205_v11 }
 0x3e4   : > { %v2191_v31 = vpop.xlane.xlu1 %2190  ;;  %v2261_v53 = vsel %vm2143_vm4, %v5193_v60, 0.0 }
 0x3e5   : > { %v5196_v62 = vpop.eup %4029  ;;  %v2236_v49 = vmul.f32 1.442695, %v2206_v61  ;;  %v2207_v50 = vsub.f32 %v5138_v45, %v2191_v31  ;;  %v2506_v31 = vsel %vm2363_vm3, %v1761_v54, 0 }
 0x3e6   : > { %v2264_v63 = vsel %vm2143_vm4, %v5196_v62, 0.0  ;;  %v5234_v19 = vpop.permute.xlu0 %1477 }
 0x3e7   : > { %v5203_v3 = vpop.eup %4031  ;;  %2262 = vadd.xlane.f32.xlu0 %v2261_v53  ;;  %2265 = vadd.xlane.f32.xlu1 %v2264_v63  ;;  %4039 = vpow2.f32 %v2236_v49  ;;  %v2238_v36 = vmul.f32 1.442695, %v2207_v50 }
 0x3e8   : > { %v2267_v16 = vsel %vm2143_vm4, %v5203_v3, 0.0  ;;  %v5236_v20 = vpop.permute.xlu1 %1480 }
 0x3e9   : > { %v5205_v4 = vpop.eup %4033  ;;  %4041 = vpow2.f32 %v2238_v36  ;;  %v1518_v49 = vcombine.low %v5150_v57, %v5236_v20  ;;  %v1519_v53 = vcombine.high %v5150_v57, %v5236_v20 }
 0x3ea   : > { %v2270_v45 = vsel %vm2143_vm4, %v5205_v4, 0.0  ;;  %4043 = vpow2.f32 %v2234_v12 }
 0x3eb   : > { %v5211_v51 = vpop.eup %4035  ;;  %2268 = vadd.xlane.f32.xlu0 %v2267_v16  ;;  %2271 = vadd.xlane.f32.xlu1 %v2270_v45  ;;  %v1533_v12 = vrot.slane %v1519_v53, %v4794_v48 }
 0x3ec   : > { %v2273_v7 = vsel %vm2143_vm4, %v5211_v51, 0.0 }
 0x3ed   : > { %v5215_v18 = vpop.eup %4037 }
 0x3ee   : > { %v2276_v17 = vsel %vm2143_vm4, %v5215_v18, 0.0 }
 0x3ef   : > { %2274 = vadd.xlane.f32.xlu0 %v2273_v7 }
 0x3f1   : > { %v5219_v9 = vpop.eup %4039 }
 0x3f2   : > { %v2282_v10 = vsel %vm2143_vm4, %v5219_v9, 0.0 }
 0x3f3   : > { %2277 = vadd.xlane.f32.xlu0 %v2276_v17  ;;  %v5223_v15 = vpop.eup %4041 }
 0x3f4   : > { %v2285_v42 = vsel %vm2143_vm4, %v5223_v15, 0.0  ;;  %v5230_v13 = vpop.eup %4043 }
 0x3f5   : > { %v2279_v40 = vsel %vm2143_vm4, %v5230_v13, 0.0 }
 0x3f7   : > { %2283 = vadd.xlane.f32.xlu0 %v2282_v10 }
 0x3fb   : > { %2286 = vadd.xlane.f32.xlu0 %v2285_v42 }
 0x3fc   : > { %1483 = vrot.lane.b32.xlu1 %v4785_v34, %s4365_s16  ;;  %s4253_s16 = sshll.u32 %s4375_s13, 4  ;;  %s4254_s16 = int_to_ptr.vmem [resolvable:$false] %s4253_s16 }
 0x3fd   : > { %p4256_p3 = scmp.lt.s32.totalorder %s5415_s7, %s4254_s16 }
 0x420   : > { %2280 = vadd.xlane.f32.xlu1 %v2279_v40 }
 0x45c   : > { %v2242_v35 = vpop.xlane.xlu0 %2241 }
 0x45d   : > { %4045 = vrcp.f32 %v2242_v35 }
 0x460   : > { %v2248_v23 = vpop.xlane.xlu0 %2247 }
 0x461   : > { %4047 = vrcp.f32 %v2248_v23 }
 0x462   : > { %v2245_v24 = vpop.xlane.xlu1 %2244 }
 0x463   : > { %4049 = vrcp.f32 %v2245_v24 }
 0x466   : > { %v2251_v34 = vpop.xlane.xlu1 %2250 }
 0x467   : > { %v4046_v44 = vpop.eup %4045  ;;  %4051 = vrcp.f32 %v2251_v34 }
 0x468   : > { %v2304_v25 = vmul.f32 %v4046_v44, %v5156_v6 }
 0x46a   : > { %vm2320_vm5 = vcmp.ne.f32.partialorder %v2304_v25, %v2304_v25 }
 0x46b   : > { %v4048_v41 = vpop.eup %4047  ;;  %v2336_v33 = vsel %vm2320_vm5, 0.0, %v2304_v25 }
 0x46c   : > { %v2254_v28 = vpop.xlane.xlu0 %2253  ;;  %v2306_v37 = vmul.f32 %v4048_v41, %v5160_v5 }
 0x46d   : > { %v4050_v29 = vpop.eup %4049  ;;  %4053 = vrcp.f32 %v2254_v28 }
 0x46e   : > { %v2305_v38 = vmul.f32 %v4050_v29, %v5166_v43  ;;  %v2257_v8 = vpop.xlane.xlu1 %2256  ;;  %vm2322_vm7 = vcmp.ne.f32.partialorder %v2306_v37, %v2306_v37  ;;  %v2459_v43 = vsel %vm2363_vm3, %v1760_v32, 0 }
 0x46f   : > { %4055 = vrcp.f32 %v2257_v8  ;;  %v2338_v1 = vsel %vm2322_vm7, 0.0, %v2306_v37 }
 0x470   : > { %vm2321_vm6 = vcmp.ne.f32.partialorder %v2305_v38, %v2305_v38  ;;  %v2260_v30 = vpop.xlane.xlu0 %2259 }
 0x471   : > { %v4052_v21 = vpop.eup %4051  ;;  %4057 = vrcp.f32 %v2260_v30  ;;  %v2337_v6 = vsel %vm2321_vm6, 0.0, %v2305_v38 }
 0x472   : > { %v2307_v46 = vmul.f32 %v4052_v21, %v5171_v14  ;;  %v2352_v26 = vpack.c.bf16 %v2337_v6, %v2336_v33 }
 0x474   : > { %vm2323_vm8 = vcmp.ne.f32.partialorder %v2307_v46, %v2307_v46  ;;  %v2263_v52 = vpop.xlane.xlu0 %2262  ;;  %v2266_v5 = vpop.xlane.xlu1 %2265  ;;  %3796 = vmatmul.mubr.msk.bf16.vlgmr.msra.gmra.mrb[20].mxu1 %vm2143_vm4, %v2352_v26 }
 0x475   : > { %4059 = vrcp.f32 %v2263_v52  ;;  %3806 = vmatpush3.bf16.msra.mxu1 %v2459_v43  ;;  %v2339_v22 = vsel %vm2323_vm8, 0.0, %v2307_v46  ;;  %3807 = vmatprep.mubr.msk.bf16.mxu1 %vm4358_vm0, %v4357_v0 }
 0x476   : > { %v2353_v58 = vpack.c.bf16 %v2339_v22, %v2338_v1  ;;  %3817 = vmatprep.subr.bf16.mxu1 %v4357_v0  ;;  %4061 = vrcp.f32 %v2266_v5 }
 0x477   : > { %v4054_v14 = vpop.eup %4053 }
 0x478   : > { %v2308_v27 = vmul.f32 %v4054_v14, %v5179_v39  ;;  %v2269_v59 = vpop.xlane.xlu0 %2268  ;;  %v2272_v61 = vpop.xlane.xlu1 %2271  ;;  %3802 = vmatmul.mubr.msk.bf16.vlgmr.msra.gmra.mrb[24].mxu0 %vm2143_vm4, %v2353_v58 }
 0x479   : > { %v4056_v2 = vpop.eup %4055  ;;  %3812 = vmatpush3.bf16.msra.mxu0 %v2506_v31  ;;  %3813 = vmatprep.mubr.msk.bf16.mxu0 %vm4358_vm0, %v4357_v0  ;;  %4063 = vrcp.f32 %v2269_v59 }
 0x47a   : > { %vm2324_vm9 = vcmp.ne.f32.partialorder %v2308_v27, %v2308_v27  ;;  %v2309_v50 = vmul.f32 %v4056_v2, %v5184_v47  ;;  %3823 = vmatprep.subr.bf16.mxu0 %v4357_v0  ;;  %v1526_v47 = vrot.slane %v1518_v49, %v4794_v48 }
 0x47b   : > { %v4058_v39 = vpop.eup %4057  ;;  %v2340_v16 = vsel %vm2324_vm9, 0.0, %v2308_v27  ;;  %vm3344_vm9 = vcmask 130048  }
 0x47c   : > { %vm2325_vm10 = vcmp.ne.f32.partialorder %v2309_v50, %v2309_v50  ;;  %v2275_v63 = vpop.xlane.xlu0 %2274  ;;  %v1484_v36 = vpop.permute.xlu1 %1483  ;;  %v2310_v10 = vmul.f32 %v4058_v39, %v5189_v56 }
 0x47d   : > { %4065 = vrcp.f32 %v2275_v63  ;;  %v1534_v45 = vcombine.low %v5234_v19, %v1484_v36  ;;  %v1535_v7 = vcombine.high %v5234_v19, %v1484_v36  ;;  %v2341_v17 = vsel %vm2325_vm10, 0.0, %v2309_v50 }
 0x47e   : > { %v2354_v42 = vpack.c.bf16 %v2341_v17, %v2340_v16  ;;  %4067 = vrcp.f32 %v2272_v61  ;;  %vm2326_vm11 = vcmp.ne.f32.partialorder %v2310_v10, %v2310_v10  ;;  %vm3347_vm10 = vcmask 162816  }
 0x47f   : > { %v4060_v11 = vpop.eup %4059  ;;  %v1542_v57 = vrot.slane %v1534_v45, %v4794_v48  ;;  %v1549_v40 = vrot.slane %v1535_v7, %v4794_v48  ;;  %v2342_v30 = vsel %vm2326_vm11, 0.0, %v2310_v10  ;;  %vm3353_vm11 = vcmask 228352  }
 0x480   : > { %v2311_v35 = vmul.f32 %v4060_v11, %v5193_v60  ;;  %v5270_v20 = vpop.xlane.xlu0 %2277  ;;  %3808 = vmatmul.mubr.msk.bf16.vlgmr.msra.gmra.mrb[24].mxu1 %vm2143_vm4, %v2354_v42  ;;  %v4062_v60 = vpop.eup %4061 }
 0x481   : > { %v1582_v19 = vcombine.low %v1526_v47, %v1542_v57  ;;  %v1583_v23 = vcombine.high %v1526_v47, %v1542_v57  ;;  %v1598_v24 = vcombine.low %v1533_v12, %v1549_v40  ;;  %3819 = vmatprep.mubr.msk.bf16.mxu1 %vm4358_vm0, %v4357_v0  ;;  %v1599_v56 = vcombine.high %v1533_v12, %v1549_v40 }
 0x482   : > { %vm2327_vm12 = vcmp.ne.f32.partialorder %v2311_v35, %v2311_v35  ;;  %v2312_v52 = vmul.f32 %v4062_v60, %v5196_v62 }
 0x483   : > { %v1590_v34 = vrot.slane %v1582_v19, %v4800_v55  ;;  %v1597_v44 = vrot.slane %v1583_v23, %v4800_v55  ;;  %v1606_v25 = vrot.slane %v1598_v24, %v4800_v55  ;;  %v1613_v41 = vrot.slane %v1599_v56, %v4800_v55  ;;  %v4064_v37 = vpop.eup %4063 }
 0x484   : > { %v2284_v28 = vpop.xlane.xlu0 %2283  ;;  %v2343_v29 = vsel %vm2327_vm12, 0.0, %v2311_v35  ;;  %v2313_v5 = vmul.f32 %v4064_v37, %v5203_v3  ;;  %vm2328_vm13 = vcmp.ne.f32.partialorder %v2312_v52, %v2312_v52 }
 0x485   : > { %v3629_v38 = vcombine.low %v1590_v34, %v1597_v44  ;;  %v3631_v8 = vcombine.high %v1590_v34, %v1597_v44  ;;  %v3633_v32 = vcombine.low %v1606_v25, %v1613_v41  ;;  %v3635_v21 = vcombine.high %v1606_v25, %v1613_v41 }
 0x486   : > { %v2355_v33 = vpack.c.bf16 %v2343_v29, %v2342_v30  ;;  %4069 = vrcp.f32 %v2284_v28  ;;  %vm2329_vm14 = vcmp.ne.f32.partialorder %v2313_v5, %v2313_v5  ;;  %v2344_v7 = vsel %vm2328_vm13, 0.0, %v2312_v52 }
 0x487   : > { %v4066_v6 = vpop.eup %4065  ;;  %v1637_v46 = vrot.slane %v3629_v38, %v4794_v48  ;;  %v1653_v26 = vrot.slane %v3631_v8, %v4794_v48  ;;  %v1669_v43 = vrot.slane %v3633_v32, %v4794_v48  ;;  %v1685_v54 = vrot.slane %v3635_v21, %v4794_v48 }
 0x488   : > { %3814 = vmatmul.mubr.msk.bf16.vlgmr.msra.gmra.mrb[28].mxu0 %vm2143_vm4, %v2355_v33  ;;  %v2287_v1 = vpop.xlane.xlu0 %2286  ;;  %v4068_v22 = vpop.eup %4067  ;;  %v2315_v58 = vmul.f32 %v4066_v6, %v5211_v51  ;;  %v2345_v16 = vsel %vm2329_vm14, 0.0, %v2313_v5 }
 0x489   : > { %4071 = vrcp.f32 %v2287_v1  ;;  %v1702_v14 = vcombine.low %v1637_v46, %v1653_v26  ;;  %3825 = vmatprep.mubr.msk.bf16.mxu0 %vm4358_vm0, %v4357_v0  ;;  %v1703_v27 = vcombine.high %v1637_v46, %v1653_v26  ;;  %v1734_v59 = vcombine.low %v1669_v43, %v1685_v54 }
 0x48a   : > { %v1735_v62 = vcombine.high %v1669_v43, %v1685_v54  ;;  %v2314_v31 = vmul.f32 %v4068_v22, %v5205_v4  ;;  %vm2331_vm15 = vcmp.ne.f32.partialorder %v2315_v58, %v2315_v58  ;;  %v2356_v12 = vpack.c.bf16 %v2345_v16, %v2344_v7 }
 0x48b   : > { %v1710_v3 = vrot.slane %v1702_v14, %v4800_v55  ;;  %v1717_v61 = vrot.slane %v1703_v27, %v4800_v55  ;;  %v1742_v2 = vrot.slane %v1734_v59, %v4800_v55  ;;  %v2347_v17 = vsel %vm2331_vm15, 0.0, %v2315_v58 }
 0x48c   : > { %v1749_v49 = vrot.slane %v1735_v62, %v4800_v55  ;;  %vm2330_vm5 = vcmp.ne.f32.partialorder %v2314_v31, %v2314_v31  ;;  %4073 = vrcp.f32 %v5270_v20 }
 0x48d   : > { %v1754_v51 = vcombine.low %v1710_v3, %v1742_v2  ;;  %v1755_v50 = vcombine.high %v1710_v3, %v1742_v2  ;;  %v2346_v57 = vsel %vm2330_vm5, 0.0, %v2314_v31 }
 0x48e   : > { %v1756_v39 = vcombine.low %v1717_v61, %v1749_v49  ;;  %v1757_v53 = vcombine.high %v1717_v61, %v1749_v49  ;;  %v2357_v19 = vpack.c.bf16 %v2347_v17, %v2346_v57 }
 0x48f   : > { %v1762_v63 = vpack.c.bf16 %v1754_v51, %v1754_v51  ;;  %v1763_v36 = vpack.c.bf16 %v1755_v50, %v1755_v50 }
 0x490   : > { %v4070_v45 = vpop.eup %4069  ;;  %v1764_v10 = vpack.c.bf16 %v1756_v39, %v1756_v39  ;;  %v1765_v42 = vpack.c.bf16 %v1757_v53, %v1757_v53 }
 0x491   : > { %v2553_v4 = vsel %vm2363_vm3, %v1762_v63, 0  ;;  %v2600_v47 = vsel %vm2363_vm3, %v1763_v36, 0  ;;  %v2318_v40 = vmul.f32 %v4070_v45, %v5219_v9 }
 0x492   : > { %3818 = vmatpush3.bf16.msra.mxu1 %v2553_v4  ;;  %3824 = vmatpush3.bf16.msra.mxu0 %v2600_v47  ;;  %v2647_v23 = vsel %vm2363_vm3, %v1764_v10, 0  ;;  %v2694_v24 = vsel %vm2363_vm3, %v1765_v42, 0 }
 0x493   : > { %v4072_v11 = vpop.eup %4071  ;;  %3829 = vmatprep.subr.bf16.mxu1 %v4357_v0  ;;  %3835 = vmatprep.subr.bf16.mxu0 %v4357_v0  ;;  %vm2334_vm7 = vcmp.ne.f32.partialorder %v2318_v40, %v2318_v40 }
 0x494   : > { %v2319_v35 = vmul.f32 %v4072_v11, %v5223_v15  ;;  %v2350_v15 = vsel %vm2334_vm7, 0.0, %v2318_v40 }
 0x495   : > { %3820 = vmatmul.mubr.msk.bf16.vlgmr.msra.gmra.mrb[28].mxu1 %vm2143_vm4, %v2356_v12  ;;  %3826 = vmatmul.mubr.msk.bf16.vlgmr.msra.gmra.mrb[32].mxu0 %vm2143_vm4, %v2357_v19 }
 0x496   : > { %vm2335_vm6 = vcmp.ne.f32.partialorder %v2319_v35, %v2319_v35  ;;  %3830 = vmatpush3.bf16.msra.mxu1 %v2647_v23  ;;  %3836 = vmatpush3.bf16.msra.mxu0 %v2694_v24  ;;  %v4074_v44 = vpop.eup %4073 }
 0x497   : > { %3837 = vmatprep.mubr.msk.bf16.mxu0 %vm4358_vm0, %v4357_v0  ;;  %3831 = vmatprep.mubr.msk.bf16.mxu1 %vm4358_vm0, %v4357_v0  ;;  %v2351_v9 = vsel %vm2335_vm6, 0.0, %v2319_v35  ;;  %v2316_v25 = vmul.f32 %v4074_v44, %v5215_v18 }
 0x498   : > { %3841 = vmatprep.subr.bf16.mxu1 %v4357_v0  ;;  %v2359_v56 = vpack.c.bf16 %v2351_v9, %v2350_v15 }
 0x499   : > { %vm2332_vm3 = vcmp.ne.f32.partialorder %v2316_v25, %v2316_v25 }
 0x49a   : > { %v2348_v28 = vsel %vm2332_vm3, 0.0, %v2316_v25 }
 0x49d   : > { %3838 = vmatmul.mubr.msk.bf16.vlgmr.msra.gmra.mrb[36].mxu0 %vm2143_vm4, %v2359_v56 }
 0x4ad   : > { %v2281_v34 = vpop.xlane.xlu1 %2280 }
 0x4ae   : > { %4075 = vrcp.f32 %v2281_v34 }
 0x4b8   : > { %v4076_v60 = vpop.eup %4075 }
 0x4b9   : > { %v2317_v41 = vmul.f32 %v4076_v60, %v5230_v13 }
 0x4bb   : > { %vm2333_vm8 = vcmp.ne.f32.partialorder %v2317_v41, %v2317_v41 }
 0x4bc   : > { %v2349_v29 = vsel %vm2333_vm8, 0.0, %v2317_v41 }
 0x4bd   : > { %v2358_v37 = vpack.c.bf16 %v2349_v29, %v2348_v28 }
 0x4bf   : > { %3832 = vmatmul.mubr.msk.bf16.vlgmr.msra.gmra.mrb[32].mxu1 %vm2143_vm4, %v2358_v37 }
 0x4c0   : > { %3845 = vmatprep.mubr.msk.bf16.mxu1 %vm4358_vm0, %v4357_v0  ;;  %vm3341_vm0 = vcmask 97280  }
 0x547   : > { %v2401_v38 = vpop.f32.mrb[20].mxu1 }
 0x548   : > { %v3797_v20 = vpop.f32.mrb[21].mxu1 }
 0x549   : > { %v2404_v8 = vpop.f32.mrb[22].mxu1 }
 0x54a   : > { %v3798_v30 = vpop.f32.mrb[23].mxu1 }
 0x54b   : > { %v2448_v32 = vpop.f32.mrb[24].mxu0 }
 0x54c   : > { %v3803_v21 = vpop.f32.mrb[25].mxu0 }
 0x54d   : > { %v2451_v18 = vpop.f32.mrb[26].mxu0 }
 0x54e   : > { %v3804_v33 = vpop.f32.mrb[27].mxu0 }
 0x553   : > { %v2495_v6 = vpop.f32.mrb[24].mxu1 }
 0x554   : > { %v2737_v46 = vcombine.low %v2401_v38, %v2495_v6  ;;  %v2738_v13 = vcombine.high %v2401_v38, %v2495_v6  ;;  %v3809_v26 = vpop.f32.mrb[25].mxu1 }
 0x555   : > { %v2498_v52 = vpop.f32.mrb[26].mxu1 }
 0x556   : > { %v2873_v5 = vcombine.low %v2404_v8, %v2498_v52  ;;  %v2874_v43 = vcombine.high %v2404_v8, %v2498_v52  ;;  %v3810_v54 = vpop.f32.mrb[27].mxu1  ;;  %v2745_v27 = vrot.slane %v2737_v46, %v4794_v48  ;;  %v2752_v59 = vrot.slane %v2738_v13, %v4794_v48 }
 0x558   : > { %v2881_v63 = vrot.slane %v2873_v5, %v4794_v48  ;;  %v2888_v36 = vrot.slane %v2874_v43, %v4794_v48 }
 0x55b   : > { %v2542_v1 = vpop.f32.mrb[28].mxu0 }
 0x55c   : > { %v2753_v22 = vcombine.low %v2448_v32, %v2542_v1  ;;  %v2754_v58 = vcombine.high %v2448_v32, %v2542_v1  ;;  %v3815_v14 = vpop.f32.mrb[29].mxu0 }
 0x55d   : > { %v2545_v62 = vpop.f32.mrb[30].mxu0 }
 0x55e   : > { %v2761_v3 = vrot.slane %v2753_v22, %v4794_v48  ;;  %v2768_v61 = vrot.slane %v2754_v58, %v4794_v48  ;;  %v2889_v31 = vcombine.low %v2451_v18, %v2545_v62  ;;  %v2890_v2 = vcombine.high %v2451_v18, %v2545_v62  ;;  %v3816_v49 = vpop.f32.mrb[31].mxu0 }
 0x560   : > { %v2801_v51 = vcombine.low %v2745_v27, %v2761_v3  ;;  %v2802_v50 = vcombine.high %v2745_v27, %v2761_v3  ;;  %v2817_v39 = vcombine.low %v2752_v59, %v2768_v61  ;;  %v2818_v53 = vcombine.high %v2752_v59, %v2768_v61 }
 0x561   : > { %v2897_v16 = vrot.slane %v2889_v31, %v4794_v48  ;;  %v2904_v45 = vrot.slane %v2890_v2, %v4794_v48 }
 0x562   : > { %v2809_v7 = vrot.slane %v2801_v51, %v4800_v55  ;;  %v2816_v17 = vrot.slane %v2802_v50, %v4800_v55  ;;  %v2825_v4 = vrot.slane %v2817_v39, %v4800_v55  ;;  %v2832_v47 = vrot.slane %v2818_v53, %v4800_v55 }
 0x563   : > { %v2937_v10 = vcombine.low %v2881_v63, %v2897_v16  ;;  %v2938_v42 = vcombine.high %v2881_v63, %v2897_v16  ;;  %v2953_v11 = vcombine.low %v2888_v36, %v2904_v45  ;;  %v2954_v12 = vcombine.high %v2888_v36, %v2904_v45 }
 0x564   : > { %v3652_v57 = vcombine.low %v2809_v7, %v2816_v17  ;;  %v3654_v40 = vcombine.high %v2809_v7, %v2816_v17  ;;  %v3656_v35 = vcombine.low %v2825_v4, %v2832_v47  ;;  %v3658_v19 = vcombine.high %v2825_v4, %v2832_v47 }
 0x565   : > { %v2945_v23 = vrot.slane %v2937_v10, %v4800_v55  ;;  %v2952_v24 = vrot.slane %v2938_v42, %v4800_v55  ;;  %v2961_v9 = vrot.slane %v2953_v11, %v4800_v55  ;;  %v2968_v15 = vrot.slane %v2954_v12, %v4800_v55 }
 0x566   : > { %v3017_v56 = vrot.slane %v3652_v57, %v4794_v48  ;;  %v3033_v34 = vrot.slane %v3654_v40, %v4794_v48  ;;  %v3049_v44 = vrot.slane %v3656_v35, %v4794_v48  ;;  %v3065_v25 = vrot.slane %v3658_v19, %v4794_v48 }
 0x567   : > { %v3660_v60 = vcombine.low %v2945_v23, %v2952_v24  ;;  %v3662_v41 = vcombine.high %v2945_v23, %v2952_v24  ;;  %v3664_v28 = vcombine.low %v2961_v9, %v2968_v15  ;;  %v3666_v29 = vcombine.high %v2961_v9, %v2968_v15 }
 0x568   : > { %v3074_v37 = vcombine.high %v3017_v56, %v3033_v34  ;;  %v3106_v38 = vcombine.high %v3049_v44, %v3065_v25  ;;  %v3073_v20 = vcombine.low %v3017_v56, %v3033_v34  ;;  %v3105_v8 = vcombine.low %v3049_v44, %v3065_v25  ;;  %v2589_v33 = vpop.f32.mrb[28].mxu1  ;;  %v2636_v6 = vpop.f32.mrb[32].mxu0 }
 0x569   : > { %v3153_v30 = vrot.slane %v3660_v60, %v4794_v48  ;;  %v3169_v32 = vrot.slane %v3662_v41, %v4794_v48  ;;  %v3185_v21 = vrot.slane %v3664_v28, %v4794_v48  ;;  %v3201_v18 = vrot.slane %v3666_v29, %v4794_v48  ;;  %v3821_v46 = vpop.f32.mrb[29].mxu1  ;;  %v3827_v13 = vpop.f32.mrb[33].mxu0 }
 0x56a   : > { %v3088_v26 = vrot.slane %v3074_v37, %v4800_v55  ;;  %v3120_v52 = vrot.slane %v3106_v38, %v4800_v55  ;;  %v5343_v5 = vrot.slane %v3073_v20, %v4800_v55  ;;  %v5346_v43 = vrot.slane %v3105_v8, %v4800_v55  ;;  %v2592_v54 = vpop.f32.mrb[30].mxu1  ;;  %v2639_v1 = vpop.f32.mrb[34].mxu0 }
 0x56b   : > { %v3210_v22 = vcombine.high %v3153_v30, %v3169_v32  ;;  %v3242_v58 = vcombine.high %v3185_v21, %v3201_v18  ;;  %v3209_v14 = vcombine.low %v3153_v30, %v3169_v32  ;;  %v3241_v27 = vcombine.low %v3185_v21, %v3201_v18  ;;  %v3822_v59 = vpop.f32.mrb[31].mxu1  ;;  %v3828_v62 = vpop.f32.mrb[35].mxu0 }
 0x56c   : > { %v3139_v3 = vcombine.low %v3088_v26, %v3120_v52  ;;  %v3137_v61 = vcombine.low %v5343_v5, %v5346_v43  ;;  %v3138_v31 = vcombine.high %v5343_v5, %v5346_v43  ;;  %v3140_v2 = vcombine.high %v3088_v26, %v3120_v52 }
 0x56d   : > { %v3224_v49 = vrot.slane %v3210_v22, %v4800_v55  ;;  %v3256_v51 = vrot.slane %v3242_v58, %v4800_v55  ;;  %v5355_v50 = vrot.slane %v3209_v14, %v4800_v55  ;;  %v5358_v39 = vrot.slane %v3241_v27, %v4800_v55 }
 0x56f   : > { %v3275_v53 = vcombine.low %v3224_v49, %v3256_v51  ;;  %v3274_v63 = vcombine.high %v5355_v50, %v5358_v39  ;;  %v3273_v36 = vcombine.low %v5355_v50, %v5358_v39  ;;  %v3276_v16 = vcombine.high %v3224_v49, %v3256_v51 }
 0x570   : > { %v2730_v17 = vpop.f32.mrb[36].mxu0 }
 0x571   : > { %v3983_v45 = vpack.i.bf16 %v3275_v53, %v3139_v3  ;;  %v3978_v7 = vpack.i.bf16 %v3274_v63, %v3138_v31  ;;  %v3988_v4 = vpack.i.bf16 %v3276_v16, %v3140_v2  ;;  %v2785_v47 = vcombine.low %v2636_v6, %v2730_v17  ;;  %v3839_v42 = vpop.f32.mrb[37].mxu0 }
 0x572   : > { %v2786_v10 = vcombine.high %v2636_v6, %v2730_v17  ;;  %v2733_v11 = vpop.f32.mrb[38].mxu0 }
 0x573   : > { %3984 = vrot.lane.b32.xlu0 %v3983_v45, %s4368_s21  ;;  %3979 = vrot.lane.b32.xlu1 %v3978_v7, %s4369_s2  ;;  %v2921_v12 = vcombine.low %v2639_v1, %v2733_v11  ;;  %v2922_v57 = vcombine.high %v2639_v1, %v2733_v11  ;;  %v3840_v40 = vpop.f32.mrb[39].mxu0  ;;  %v2793_v9 = vrot.slane %v2785_v47, %v4794_v48  ;;  %s4255_s2 = scalar_lea.vmem %s4254_s16, 512 }
 0x574   : > { %v2800_v15 = vrot.slane %v2786_v10, %v4794_v48  ;;  %p4257_p10 = scmp.lt.s32.totalorder %s4255_s2, %s4249_s22 }
 0x575   : > { %v2929_v20 = vrot.slane %v2921_v12, %v4794_v48  ;;  %v2936_v8 = vrot.slane %v2922_v57, %v4794_v48 }
 0x576   : > { %p4258_p6 = por %p4257_p10, %p4256_p3 }
 0x577   : > { %3989 = vrot.lane.b32.xlu1 %v3988_v4, %s4370_s15 }
 0x578   : > { %p4259_p5 = pnand %p4258_p6, %p4252_p8 }
 0x592   : > { %v2683_v35 = vpop.f32.mrb[32].mxu1 }
 0x593   : > { %v2769_v19 = vcombine.low %v2589_v33, %v2683_v35  ;;  %v2770_v23 = vcombine.high %v2589_v33, %v2683_v35  ;;  %v3833_v24 = vpop.f32.mrb[33].mxu1 }
 0x594   : > { %v2686_v56 = vpop.f32.mrb[34].mxu1 }
 0x595   : > { %v2777_v34 = vrot.slane %v2769_v19, %v4794_v48  ;;  %v2784_v44 = vrot.slane %v2770_v23, %v4794_v48  ;;  %v2905_v25 = vcombine.low %v2592_v54, %v2686_v56  ;;  %v2906_v60 = vcombine.high %v2592_v54, %v2686_v56  ;;  %v3834_v41 = vpop.f32.mrb[35].mxu1  ;;  %v3358_v56 = vld [vmem:[#allocation11 + $0x8] sm:$0xff] }
 0x597   : > { %v2833_v28 = vcombine.low %v2777_v34, %v2793_v9  ;;  %v2834_v29 = vcombine.high %v2777_v34, %v2793_v9  ;;  %v2849_v37 = vcombine.low %v2784_v44, %v2800_v15  ;;  %v2850_v38 = vcombine.high %v2784_v44, %v2800_v15  ;;  %v3357_v15 = vld [vmem:[#allocation11] sm:$0xff] }
 0x598   : > { %v2913_v30 = vrot.slane %v2905_v25, %v4794_v48  ;;  %v2920_v32 = vrot.slane %v2906_v60, %v4794_v48 }
 0x599   : > { %v2841_v21 = vrot.slane %v2833_v28, %v4800_v55  ;;  %v2848_v18 = vrot.slane %v2834_v29, %v4800_v55  ;;  %v2857_v33 = vrot.slane %v2849_v37, %v4800_v55  ;;  %v2864_v6 = vrot.slane %v2850_v38, %v4800_v55  ;;  %v3359_v38 = vld [vmem:[#allocation11 + $0x10] sm:$0xff] }
 0x59a   : > { %v2969_v46 = vcombine.low %v2913_v30, %v2929_v20  ;;  %v2970_v13 = vcombine.high %v2913_v30, %v2929_v20  ;;  %v2985_v26 = vcombine.low %v2920_v32, %v2936_v8  ;;  %v2986_v52 = vcombine.high %v2920_v32, %v2936_v8  ;;  %v3360_v20 = vld [vmem:[#allocation11 + $0x18] sm:$0xff] }
 0x59b   : > { %v3653_v54 = vcombine.low %v2841_v21, %v2848_v18  ;;  %v3655_v1 = vcombine.high %v2841_v21, %v2848_v18  ;;  %v3657_v22 = vcombine.low %v2857_v33, %v2864_v6  ;;  %v3659_v58 = vcombine.high %v2857_v33, %v2864_v6 }
 0x59c   : > { %v2977_v14 = vrot.slane %v2969_v46, %v4800_v55  ;;  %v2984_v27 = vrot.slane %v2970_v13, %v4800_v55  ;;  %v2993_v59 = vrot.slane %v2985_v26, %v4800_v55  ;;  %v3000_v62 = vrot.slane %v2986_v52, %v4800_v55 }
 0x59d   : > { %v3024_v3 = vrot.slane %v3653_v54, %v4794_v48  ;;  %v3040_v31 = vrot.slane %v3655_v1, %v4794_v48  ;;  %v3056_v2 = vrot.slane %v3657_v22, %v4794_v48  ;;  %v3072_v49 = vrot.slane %v3659_v58, %v4794_v48 }
 0x59e   : > { %v3661_v51 = vcombine.low %v2977_v14, %v2984_v27  ;;  %v3663_v53 = vcombine.high %v2977_v14, %v2984_v27  ;;  %v3665_v63 = vcombine.low %v2993_v59, %v3000_v62  ;;  %v3667_v16 = vcombine.high %v2993_v59, %v3000_v62 }
 0x59f   : > { %v3089_v45 = vcombine.low %v3024_v3, %v3040_v31  ;;  %v3121_v7 = vcombine.low %v3056_v2, %v3072_v49  ;;  %v3090_v17 = vcombine.high %v3024_v3, %v3040_v31  ;;  %v3122_v4 = vcombine.high %v3056_v2, %v3072_v49 }
 0x5a0   : > { %v3160_v47 = vrot.slane %v3661_v51, %v4794_v48  ;;  %v3176_v10 = vrot.slane %v3663_v53, %v4794_v48  ;;  %v3192_v42 = vrot.slane %v3665_v63, %v4794_v48  ;;  %v3208_v11 = vrot.slane %v3667_v16, %v4794_v48 }
 0x5a1   : > { %v3097_v12 = vrot.slane %v3089_v45, %v4800_v55  ;;  %v3129_v57 = vrot.slane %v3121_v7, %v4800_v55  ;;  %v3104_v40 = vrot.slane %v3090_v17, %v4800_v55  ;;  %v3136_v35 = vrot.slane %v3122_v4, %v4800_v55 }
 0x5a2   : > { %v3225_v19 = vcombine.low %v3160_v47, %v3176_v10  ;;  %v3257_v23 = vcombine.low %v3192_v42, %v3208_v11  ;;  %v3226_v24 = vcombine.high %v3160_v47, %v3176_v10  ;;  %v3258_v9 = vcombine.high %v3192_v42, %v3208_v11 }
 0x5a3   : > { %v3142_v34 = vcombine.high %v3097_v12, %v3129_v57  ;;  %v3141_v44 = vcombine.low %v3097_v12, %v3129_v57  ;;  %v3144_v25 = vcombine.high %v3104_v40, %v3136_v35  ;;  %v3143_v60 = vcombine.low %v3104_v40, %v3136_v35  ;;  %v3668_v40 = vld [vmem:[%s5478_s6] ss:$0 sm:$0xff] }
 0x5a4   : > { %v3233_v48 = vrot.slane %v3225_v19, %v4800_v55  ;;  %v3265_v41 = vrot.slane %v3257_v23, %v4800_v55  ;;  %v3240_v28 = vrot.slane %v3226_v24, %v4800_v55  ;;  %v3272_v29 = vrot.slane %v3258_v9, %v4800_v55 }
 0x5a5   : > { %v3361_v37 = vpack.c.bf16 %v3358_v56, %v3357_v15  ;;  %v3362_v18 = vpack.c.bf16 %v3360_v20, %v3359_v38 }
 0x5a6   : > { %v3278_v8 = vcombine.high %v3233_v48, %v3265_v41  ;;  %v3277_v30 = vcombine.low %v3233_v48, %v3265_v41  ;;  %v3280_v32 = vcombine.high %v3240_v28, %v3272_v29  ;;  %v3279_v21 = vcombine.low %v3240_v28, %v3272_v29 }
 0x5a7   : > { %3842 = vmatpush3.bf16.msra.mxu1 %v3361_v37 }
 0x5a8   : > { %v3998_v33 = vpack.i.bf16 %v3278_v8, %v3142_v34  ;;  %v3993_v6 = vpack.i.bf16 %v3277_v30, %v3141_v44  ;;  %v4008_v46 = vpack.i.bf16 %v3280_v32, %v3144_v25  ;;  %v4003_v13 = vpack.i.bf16 %v3279_v21, %v3143_v60  ;;  %3843 = vmatprep.subr.bf16.mxu1 %v4357_v0 }
 0x5aa   : > { %3999 = vrot.lane.b32.xlu0 %v3998_v33, %s4371_s17  ;;  %3994 = vrot.lane.b32.xlu1 %v3993_v6, %s4372_s18 }
 0x5ab   : > { %3844 = vmatpush3.bf16.msra.mxu1 %v3362_v18 }
 0x5ae   : > { %4009 = vrot.lane.b32.xlu0 %v4008_v46, %s4373_s10  ;;  %4004 = vrot.lane.b32.xlu1 %v4003_v13, %s4374_s19 }
 0x5e5   : > { %v3980_v55 = vpop.permute.xlu1 %3979  ;;  %v3985_v26 = vpop.permute.xlu0 %3984 }
 0x5e6   : > { %v3982_v52 = vunpack.i.h.bf16 %v3980_v55  ;;  %v3981_v54 = vunpack.i.l.bf16 %v3980_v55  ;;  %v3987_v22 = vunpack.i.h.bf16 %v3985_v26  ;;  %v3986_v58 = vunpack.i.l.bf16 %v3985_v26 }
 0x5e8   : > { %v3337_v0 = vsel %vm1766_vm2, %v3137_v61, %v3981_v54  ;;  %v3338_v14 = vsel %vm1766_vm2, %v3273_v36, %v3982_v52  ;;  %vm3350_vm2 = vcmask 195584  }
 0x5e9   : > { %v3990_v1 = vpop.permute.xlu1 %3989  ;;  %v3339_v31 = vsel %vm2143_vm4, %v3337_v0, %v3986_v58  ;;  %v3340_v2 = vsel %vm2143_vm4, %v3338_v14, %v3987_v22 }
 0x5ea   : > { %v3992_v27 = vunpack.i.h.bf16 %v3990_v1  ;;  %v3991_v59 = vunpack.i.l.bf16 %v3990_v1 }
 0x5ec   : > { %v3342_v5 = vsel %vm3341_vm0, %v3339_v31, %v3991_v59  ;;  %v3343_v43 = vsel %vm3341_vm0, %v3340_v2, %v3992_v27 }
 0x61c   : > { %v4000_v62 = vpop.permute.xlu0 %3999  ;;  %v3995_v3 = vpop.permute.xlu1 %3994 }
 0x61d   : > { %v3997_v49 = vunpack.i.h.bf16 %v3995_v3  ;;  %v3996_v51 = vunpack.i.l.bf16 %v3995_v3  ;;  %v4002_v61 = vunpack.i.h.bf16 %v4000_v62  ;;  %v4001_v53 = vunpack.i.l.bf16 %v4000_v62 }
 0x61f   : > { %v3346_v63 = vsel %vm3344_vm9, %v3343_v43, %v3997_v49  ;;  %v3345_v50 = vsel %vm3344_vm9, %v3342_v5, %v3996_v51 }
 0x620   : > { %v4010_v39 = vpop.permute.xlu0 %4009  ;;  %v4005_v36 = vpop.permute.xlu1 %4004  ;;  %v3348_v4 = vsel %vm3347_vm10, %v3345_v50, %v4001_v53  ;;  %v3349_v47 = vsel %vm3347_vm10, %v3346_v63, %v4002_v61 }
 0x621   : > { %v4012_v16 = vunpack.i.h.bf16 %v4010_v39  ;;  %v4011_v45 = vunpack.i.l.bf16 %v4010_v39  ;;  %v4007_v7 = vunpack.i.h.bf16 %v4005_v36  ;;  %v4006_v17 = vunpack.i.l.bf16 %v4005_v36 }
 0x623   : > { %v3351_v10 = vsel %vm3350_vm2, %v3348_v4, %v4006_v17  ;;  %v3352_v42 = vsel %vm3350_vm2, %v3349_v47, %v4007_v7 }
 0x624   : > { %v3354_v11 = vsel %vm3353_vm11, %v3351_v10, %v4011_v45  ;;  %v3355_v12 = vsel %vm3353_vm11, %v3352_v42, %v4012_v16 }
 0x625   : > { %v3356_v57 = vpack.c.bf16 %v3355_v12, %v3354_v11 }
 0x627   : > { %3846 = vmatmul.mubr.msk.bf16.vlgmr.msra.gmra.mrb[36].mxu1 %vm424_vm1, %v3356_v57 }
 0x6fa   : > { %v3407_v35 = vpop.f32.mrb[36].mxu1 }
 0x6fb   : > { %v3408_v19 = vadd.f32 %v3668_v40, %v3407_v35  ;;  %v3847_v23 = vpop.f32.mrb[37].mxu1 }
 0x6fc   : > { %v3410_v24 = vpop.f32.mrb[38].mxu1 }
 0x6fd   : > { %3414 = vst.msk [vmem:[%s409_s11] sm:$0xff] %vm424_vm1, %v3408_v19  ;;  %v3411_v9 = vadd.f32 %v3668_v40, %v3410_v24  ;;  %v3848_v15 = vpop.f32.mrb[39].mxu1 }
 0x6ff   : > { %3415 = vst.msk [vmem:[%s409_s11 + $0x8] sm:$0xff] %vm424_vm1, %v3411_v9 }
 0x700   : > { %4262 = shalt.err (!%p4259_p5)
}
 0x701   : > { %s4263_s15 = scalar_lea.hbm %s5421_s14, 256  ;;  %s4267_s10 = scalar_lea.hbm %s5517_s20, 512 }
 0x702   : > { %p4264_p7 = scmp.ne.s32.totalorder %s5421_s14, %s4263_s15  ;;  %p4268_p9 = scmp.lt.u32.totalorder %s5421_s14, %s5517_s20 }
 0x703   : > { %p4269_p0 = scmp.lt.u32.totalorder %s4267_s10, %s4263_s15  ;;  %p4271_p13 = scmp.lt.u32.totalorder %s4263_s15, %s5421_s14 }
 0x704   : > { %p4265_p12 = pnand %p4264_p7, %p5518_p4 }
 0x705   : > { %p4270_p2 = por %p4269_p0, %p4268_p9 }
 0x706   : > { %p4266_p11 = pneg %p4265_p12 }
 0x707   : > { %p4272_p1 = por %p4271_p13, %p4270_p2 }
 0x709   : > { %p4273_p8 = pnand %p4272_p1, %p4266_p11 }
 0x70b   : > { %4276 = shalt.err (!%p4273_p8)
}
 0x70c   : > { %s4376_s3 = smov 128  }
 0x70d   : > { %3869 = dma.vmem_to_hbm [thread:$0]  (%p5518_p4), %s5415_s7, 256, %s5421_s14, %s3417_s27, %s4376_s3, %s4376_s3, %s4368_s21  }
 0x70e PF: > { %s5519_s11 = sld [smem:[#allocation20_spill]]  ;;  %s5520_s30 = sld [smem:[#allocation21_spill]] }
 0x70f   : > { %p5522_p10 = scmp.ge.s32.totalorder %s4347_s29, 2 }
 0x714   : > { %s3447_s9 = sand.u32 1, %s5519_s11   ;;  %p5521_p3 = scmp.ne.s32.totalorder %s5520_s30, 0 }
 0x715   : > { %s3448_s23 = scalar_lea.sflag [#allocation4], %s3447_s9 }
 0x716   : > { %p3892_p6 = pnand %p5522_p10, %p5521_p3 }
 0x718   : > { %4322 = dma.done.wait (!%p3892_p6), %s3448_s23, 256  }
 0x719   : > { %4324 = vsyncadd (!%p3892_p6), %s3448_s23, 4294967040  ;;  %s28_s29 = sadd.s32 1, %s4347_s29   ;;  %s5523_s24 = smov %s4331_s25 }
 0x71a   : > { %p25_p5 = scmp.ge.s32.totalorder %s28_s29, 4   ;;  %s5524_s25 = smov %s4335_s26 }
 0x71b   : > { %s5525_s26 = smov %s4609_s12  ;;  %s5526_s27 = smov %s4343_s28 }
 0x71c   : > { %s5527_s28 = smov %s5529_s8  ;;  %27 = sbr.rel (!%p25_p5) target bundleno = 16 (0x10), region = 122 }
 0x723   :  { %3453 = vsyncpa [#allocation3], 1 }
 0x724   :  { %3455 = vsyncpa [#allocation3 + $0x1], 1 }
 0x725   :  { %3456 = vsyncpa [#allocation6], 1 }
 0x726   :  { %3458 = vsyncpa [#allocation6 + $0x1], 1 }
 0x727   :  { %3459 = vsyncpa [#allocation9], 1 }
 0x728   :  { %3460 = vsyncpa [#allocation12], 1 }
 0x729   :  { %3461 = vsyncpa [#allocation4], 1 }
 0x72a   :  { %3463 = vsyncpa [#allocation4 + $0x1], 1 }

</bundles_post_ra>
